<compile_context>
chip_gen: v5e
topology: v5e:2x2
jax: 0.10.0
libtpu: 0.0.40
codegen_flags: <defaults>
</compile_context>

<pallas_src>
import jax
import jax.numpy as jnp
from jax.experimental import pallas as pl
from jax.experimental.pallas import tpu as pltpu

# ---------------- small, module-consistent config ----------------
B, S = 2, 8
D_MODEL = 32          # input_size == output_size == hidden_size (scaled down from 512)
NHEAD = 4
HD = D_MODEL // NHEAD
DIM_FF = 64           # dim_feedforward (scaled down from 2048)
NUM_ENC_LAYERS = 2    # scaled down from 6
NUM_DEC_LAYERS = 0    # TFMLayer default: decoder contributes only its final LayerNorm
EPS = 1e-5
NEG_INF = -1e30


def _ln(x, g, b):
    mu = jnp.mean(x, axis=-1, keepdims=True)
    var = jnp.mean(jnp.square(x - mu), axis=-1, keepdims=True)
    return (x - mu) * jax.lax.rsqrt(var + EPS) * g + b


# ---------------- the single fused kernel ----------------
def _tfm_fused_kernel(x_ref, mask_ref, wqkv_ref, wo_ref, w1_ref, w2_ref,
                      smalls_ref, out_ref, mem_ref):
    """Whole TFMLayer forward in one grid step.

    x_ref     : (N, D)        activations, N = B*S rows packed into sublanes
    mask_ref  : (N, N)        additive mask: block-diag(batch) + key padding (0 / -1e30)
    wqkv_ref  : (L, D, 3D)    fused QKV projection (1/sqrt(hd) folded into the Q part)
    wo_ref    : (L, H, hd, D) head-major output projection
    w1_ref    : (L, D, F)     FFN in
    w2_ref    : (L, F, D)     FFN out
    smalls_ref: (24, 128)     ALL small vectors, one slab:
                              rows 8l..8l+7 : [bqkv|bo|b1|b2|ln1_g|ln1_b|ln2_g|ln2_b]
                              rows 8L..8L+3 : [enc_norm_g|enc_norm_b|dec_norm_g|dec_norm_b]
    out_ref   : (N, D)        decoder output (== TFMLayer return value)
    mem_ref   : (N, D)        encoder memory (computed by torch; exposed for parity)
    """
    d = x_ref.shape[1]
    num_layers, nhead, hd, _ = wo_ref.shape
    ff = w1_ref.shape[2]

    x = x_ref[...]
    mask = mask_ref[...]
    smalls = smalls_ref[...]
    base = 8 * num_layers

    # decoder path (0 decoder layers -> only its final LayerNorm).  Independent of the
    # encoder, so store it first and let its writeback hide under the encoder compute.
    out_ref[...] = _ln(x, smalls[base + 2:base + 3, :d],
                       smalls[base + 3:base + 4, :d]).astype(out_ref.dtype)

    h = x
    for l in range(num_layers):                       # static unroll (2 layers)
        vec = smalls[8 * l:8 * (l + 1)]               # (8, 128): one vreg of small params
        bqkv = vec[0:1, :3 * d]
        bo, b1, b2 = vec[1:2, :d], vec[2:3, :ff], vec[3:4, :d]
        g1, be1 = vec[4:5, :d], vec[5:6, :d]
        g2, be2 = vec[6:7, :d], vec[7:8, :d]

        # ---- self-attention -------------------------------------------------
        # one 3D-wide MXU pass for Q, K, V (scale already folded into W_q / b_q)
        qkv = jnp.dot(h, wqkv_ref[l], preferred_element_type=jnp.float32) + bqkv

        # head-batched (H, N, hd) layout built from cheap static lane slices.
        qh = jnp.stack([qkv[:, hh * hd:(hh + 1) * hd] for hh in range(nhead)], axis=0)
        kh = jnp.stack([qkv[:, d + hh * hd:d + (hh + 1) * hd] for hh in range(nhead)], axis=0)
        vh = jnp.stack([qkv[:, 2 * d + hh * hd:2 * d + (hh + 1) * hd] for hh in range(nhead)], axis=0)

        s = jnp.einsum("hqd,hkd->hqk", qh, kh, preferred_element_type=jnp.float32)
        s = s + mask                                   # batch separation + key padding
        s = s - jnp.max(s, axis=-1, keepdims=True)
        p = jnp.exp(s)                                 # masked keys underflow to exactly 0
        p = p * pl.reciprocal(jnp.sum(p, axis=-1, keepdims=True), approx=True)
        o = jnp.einsum("hqk,hkd->hqd", p, vh, preferred_element_type=jnp.float32)

        # merge heads through the head-major output projection: sum_h o_h @ Wo_h
        attn = jnp.sum(
            jnp.einsum("hne,hed->hnd", o, wo_ref[l], preferred_element_type=jnp.float32),
            axis=0) + bo

        # ---- post-norm residual + ReLU FFN (dropout == identity in eval) ----
        h1 = _ln(h + attn, g1, be1)
        f = jnp.maximum(jnp.dot(h1, w1_ref[l], preferred_element_type=jnp.float32) + b1, 0.0)
        f = jnp.dot(f, w2_ref[l], preferred_element_type=jnp.float32) + b2
        h = _ln(h1 + f, g2, be2)

    # encoder final LayerNorm -> memory
    mem_ref[...] = _ln(h, smalls[base:base + 1, :d],
                       smalls[base + 1:base + 2, :d]).astype(mem_ref.dtype)


# ---------------- parameter construction & packing (wrapper side) ----------------
def init_params(key):
    def rand(k, shape, scale=0.05):
        return scale * jax.random.normal(k, shape, dtype=jnp.float32)

    layers = []
    for l in range(NUM_ENC_LAYERS):
        ks = jax.random.split(jax.random.fold_in(key, l), 12)
        d, f = D_MODEL, DIM_FF
        layers.append(dict(
            # weights stored pre-transposed so both kernel and reference compute x @ W + b
            wq=rand(ks[0], (d, d)), bq=rand(ks[1], (d,)),
            wk=rand(ks[2], (d, d)), bk=rand(ks[3], (d,)),
            wv=rand(ks[4], (d, d)), bv=rand(ks[5], (d,)),
            wo=rand(ks[6], (d, d)), bo=rand(ks[7], (d,)),
            w1=rand(ks[8], (d, f)), b1=rand(ks[9], (f,)),
            w2=rand(ks[10], (f, d)), b2=rand(ks[11], (d,)),
            g1=jnp.ones((d,), jnp.float32), be1=jnp.zeros((d,), jnp.float32),
            g2=jnp.ones((d,), jnp.float32), be2=jnp.zeros((d,), jnp.float32),
        ))
    return dict(
        enc_layers=layers,
        enc_norm_g=jnp.ones((D_MODEL,), jnp.float32),
        enc_norm_b=jnp.zeros((D_MODEL,), jnp.float32),
        dec_norm_g=jnp.ones((D_MODEL,), jnp.float32),
        dec_norm_b=jnp.zeros((D_MODEL,), jnp.float32),
    )


def pack_params(p):
    """One-time wrapper-side repacking (applies identically to real torch weights):
       * QKV fused into one (D, 3D) matrix, 1/sqrt(head_dim) folded into the Q part,
       * output projection reshaped head-major (H, hd, D),
       * every small (<=128-lane) vector packed into ONE (24, 128) slab."""
    assert 3 * D_MODEL <= 128 and DIM_FF <= 128, "toy-size vector packing only"
    scale = 1.0 / float(HD) ** 0.5

    def row(v):
        return jnp.pad(v, (0, 128 - v.shape[0]))

    wqkv, wo_h, w1, w2, rows = [], [], [], [], []
    for lp in p["enc_layers"]:
        wqkv.append(jnp.concatenate([lp["wq"] * scale, lp["wk"], lp["wv"]], axis=1))
        wo_h.append(lp["wo"].reshape(NHEAD, HD, D_MODEL))
        w1.append(lp["w1"])
        w2.append(lp["w2"])
        bqkv = jnp.concatenate([lp["bq"] * scale, lp["bk"], lp["bv"]])
        rows += [row(bqkv), row(lp["bo"]), row(lp["b1"]), row(lp["b2"]),
                 row(lp["g1"]), row(lp["be1"]), row(lp["g2"]), row(lp["be2"])]
    rows += [row(p["enc_norm_g"]), row(p["enc_norm_b"]),
             row(p["dec_norm_g"]), row(p["dec_norm_b"])]
    while len(rows) % 8 != 0:                          # pad rows to a sublane multiple
        rows.append(jnp.zeros((128,), jnp.float32))
    return dict(wqkv=jnp.stack(wqkv), wo_h=jnp.stack(wo_h),
                w1=jnp.stack(w1), w2=jnp.stack(w2), smalls=jnp.stack(rows))


# ---------------- forward wrapper ----------------
def tfm_layer_forward(info, leng_mask, packed):
    """TFMLayer.forward(info, leng_mask) as a single fused pallas_call.

    Returns (out, memory); `out` is the torch return value (decoder final LN of info),
    `memory` is the encoder stack output (unused by the torch return but computed by
    torch at runtime -- drop the encoder path entirely if no caller reads it)."""
    bsz, seq, d = info.shape
    n = bsz * seq
    x2 = info.reshape(n, d)                            # (b, s) rows packed into sublanes

    # additive attention mask: block-diagonal over batches + key padding.
    # NOTE: a fully-padded sequence would get a uniform softmax over its padded keys
    # instead of torch's NaNs from masked_fill(-inf); not hit with the given lengths.
    bid = jnp.arange(n, dtype=jnp.int32) // seq
    allowed = (bid[:, None] == bid[None, :]) & jnp.logical_not(leng_mask.reshape(n))[None, :]
    mask = jnp.where(allowed, 0.0, NEG_INF).astype(jnp.float32)

    vm = pl.BlockSpec(memory_space=pltpu.MemorySpace.VMEM)
    out2, mem2 = pl.pallas_call(
        _tfm_fused_kernel,
        out_shape=(jax.ShapeDtypeStruct((n, d), jnp.float32),
                   jax.ShapeDtypeStruct((n, d), jnp.float32)),
        in_specs=[vm] * 7,
        out_specs=(vm, vm),
    )(x2, mask, packed["wqkv"], packed["wo_h"], packed["w1"],
      packed["w2"], packed["smalls"])
    return out2.reshape(bsz, seq, d), mem2.reshape(bsz, seq, d)


# ---------------- pure-JAX reference (mirrors torch eval semantics) ----------------
def tfm_reference(info, leng_mask, params):
    b, s, d = info.shape
    scale = 1.0 / float(HD) ** 0.5
    pad = jnp.where(leng_mask, NEG_INF, 0.0)[:, None, None, :].astype(jnp.float32)
    x = info
    h = x
    for lp in params["enc_layers"]:
        q = h @ lp["wq"] + lp["bq"]
        k = h @ lp["wk"] + lp["bk"]
        v = h @ lp["wv"] + lp["bv"]
        split = lambda t: t.reshape(b, s, NHEAD, HD).transpose(0, 2, 1, 3)
        qh, kh, vh = split(q), split(k), split(v)
        sc = jnp.einsum("bhqe,bhke->bhqk", qh, kh) * scale + pad
        pr = jax.nn.softmax(sc, axis=-1)
        o = jnp.einsum("bhqk,bhke->bhqe", pr, vh)
        o = o.transpose(0, 2, 1, 3).reshape(b, s, d)
        attn = o @ lp["wo"] + lp["bo"]
        h1 = _ln(h + attn, lp["g1"], lp["be1"])
        f = jax.nn.relu(h1 @ lp["w1"] + lp["b1"]) @ lp["w2"] + lp["b2"]
        h = _ln(h1 + f, lp["g2"], lp["be2"])
    mem = _ln(h, params["enc_norm_g"], params["enc_norm_b"])
    out = _ln(x, params["dec_norm_g"], params["dec_norm_b"])
    return out, mem


if __name__ == "__main__":
    key = jax.random.PRNGKey(0)
    kx, kp = jax.random.split(key)
    info = jax.random.normal(kx, (B, S, D_MODEL), dtype=jnp.float32)
    lengths = jnp.array([S, 5], dtype=jnp.int32)
    leng_mask = jnp.arange(S)[None, :] >= lengths[:, None]   # True == padding position
    params = init_params(kp)
    packed = pack_params(params)

    fwd = jax.jit(tfm_layer_forward)
    out, memory = fwd(info, leng_mask, packed)
    jax.block_until_ready((out, memory))

    ref_out, ref_mem = tfm_reference(info, leng_mask, params)
    err = max(float(jnp.max(jnp.abs(out - ref_out))),
              float(jnp.max(jnp.abs(memory - ref_mem))))

    assert out.shape == (B, S, D_MODEL) and memory.shape == (B, S, D_MODEL)
    assert bool(jnp.all(jnp.isfinite(out))) and bool(jnp.all(jnp.isfinite(memory)))
    assert err < 2e-2, f"max abs error vs reference: {err}"
    print("KERNEL_OK")
</pallas_src>

<mosaic_0001>
module attributes {stable_mosaic.version = 11 : i64} {
  func.func @_tfm_fused_kernel(%arg0: memref<16x32xf32, #tpu.memory_space<vmem>>, %arg1: memref<16x16xf32, #tpu.memory_space<vmem>>, %arg2: memref<2x32x96xf32, #tpu.memory_space<vmem>>, %arg3: memref<2x4x8x32xf32, #tpu.memory_space<vmem>>, %arg4: memref<2x32x64xf32, #tpu.memory_space<vmem>>, %arg5: memref<2x64x32xf32, #tpu.memory_space<vmem>>, %arg6: memref<24x128xf32, #tpu.memory_space<vmem>>, %arg7: memref<16x32xf32, #tpu.memory_space<vmem>>, %arg8: memref<16x32xf32, #tpu.memory_space<vmem>>) attributes {dimension_semantics = [], scalar_prefetch = 0 : i64, scratch_operands = 0 : i64, tpu.core_type = #tpu.core_type<tc>} {
    %c0 = arith.constant 0 : index
    %c0_0 = arith.constant 0 : index
    %0 = vector.load %arg0[%c0, %c0_0] : memref<16x32xf32, #tpu.memory_space<vmem>>, vector<16x32xf32>
    %c0_1 = arith.constant 0 : index
    %c0_2 = arith.constant 0 : index
    %1 = vector.load %arg1[%c0_1, %c0_2] : memref<16x16xf32, #tpu.memory_space<vmem>>, vector<16x16xf32>
    %c0_3 = arith.constant 0 : index
    %c0_4 = arith.constant 0 : index
    %2 = vector.load %arg6[%c0_3, %c0_4] : memref<24x128xf32, #tpu.memory_space<vmem>>, vector<24x128xf32>
    %3 = vector.extract_strided_slice %2 {offsets = [18, 0], sizes = [1, 32], strides = [1, 1]} : vector<24x128xf32> to vector<1x32xf32>
    %4 = vector.extract_strided_slice %2 {offsets = [19, 0], sizes = [1, 32], strides = [1, 1]} : vector<24x128xf32> to vector<1x32xf32>
    %cst = arith.constant dense<0.000000e+00> : vector<16xf32>
    %5 = vector.multi_reduction <add>, %0, %cst [1] : vector<16x32xf32> to vector<16xf32>
    %6 = vector.shape_cast %5 : vector<16xf32> to vector<16x1xf32>
    %cst_5 = arith.constant 3.200000e+01 : f32
    %7 = vector.broadcast %cst_5 : f32 to vector<16x1xf32>
    %8 = arith.divf %6, %7 : vector<16x1xf32>
    %9 = vector.broadcast %8 : vector<16x1xf32> to vector<16x32xf32>
    %10 = arith.subf %0, %9 : vector<16x32xf32>
    %11 = arith.mulf %10, %10 : vector<16x32xf32>
    %cst_6 = arith.constant dense<0.000000e+00> : vector<16xf32>
    %12 = vector.multi_reduction <add>, %11, %cst_6 [1] : vector<16x32xf32> to vector<16xf32>
    %13 = vector.shape_cast %12 : vector<16xf32> to vector<16x1xf32>
    %cst_7 = arith.constant 3.200000e+01 : f32
    %14 = vector.broadcast %cst_7 : f32 to vector<16x1xf32>
    %15 = arith.divf %13, %14 : vector<16x1xf32>
    %16 = vector.broadcast %8 : vector<16x1xf32> to vector<16x32xf32>
    %17 = arith.subf %0, %16 : vector<16x32xf32>
    %cst_8 = arith.constant 9.99999974E-6 : f32
    %18 = vector.broadcast %cst_8 : f32 to vector<16x1xf32>
    %19 = arith.addf %15, %18 : vector<16x1xf32>
    %20 = math.rsqrt %19 : vector<16x1xf32>
    %21 = vector.broadcast %20 : vector<16x1xf32> to vector<16x32xf32>
    %22 = arith.mulf %17, %21 : vector<16x32xf32>
    %23 = vector.broadcast %3 : vector<1x32xf32> to vector<16x32xf32>
    %24 = arith.mulf %22, %23 : vector<16x32xf32>
    %25 = vector.broadcast %4 : vector<1x32xf32> to vector<16x32xf32>
    %26 = arith.addf %24, %25 : vector<16x32xf32>
    %c0_9 = arith.constant 0 : index
    %c0_10 = arith.constant 0 : index
    %27 = vector.load %arg7[%c0_9, %c0_10] : memref<16x32xf32, #tpu.memory_space<vmem>>, vector<16x32xf32>
    tpu.vector_store %arg7[%c0_9, %c0_10], %26 {strides = array<i32>} : memref<16x32xf32, #tpu.memory_space<vmem>>, vector<16x32xf32>,
    %28 = vector.extract_strided_slice %2 {offsets = [0, 0], sizes = [8, 128], strides = [1, 1]} : vector<24x128xf32> to vector<8x128xf32>
    %29 = vector.extract_strided_slice %28 {offsets = [0, 0], sizes = [1, 96], strides = [1, 1]} : vector<8x128xf32> to vector<1x96xf32>
    %30 = vector.extract_strided_slice %28 {offsets = [1, 0], sizes = [1, 32], strides = [1, 1]} : vector<8x128xf32> to vector<1x32xf32>
    %31 = vector.extract_strided_slice %28 {offsets = [2, 0], sizes = [1, 64], strides = [1, 1]} : vector<8x128xf32> to vector<1x64xf32>
    %32 = vector.extract_strided_slice %28 {offsets = [3, 0], sizes = [1, 32], strides = [1, 1]} : vector<8x128xf32> to vector<1x32xf32>
    %33 = vector.extract_strided_slice %28 {offsets = [4, 0], sizes = [1, 32], strides = [1, 1]} : vector<8x128xf32> to vector<1x32xf32>
    %34 = vector.extract_strided_slice %28 {offsets = [5, 0], sizes = [1, 32], strides = [1, 1]} : vector<8x128xf32> to vector<1x32xf32>
    %35 = vector.extract_strided_slice %28 {offsets = [6, 0], sizes = [1, 32], strides = [1, 1]} : vector<8x128xf32> to vector<1x32xf32>
    %36 = vector.extract_strided_slice %28 {offsets = [7, 0], sizes = [1, 32], strides = [1, 1]} : vector<8x128xf32> to vector<1x32xf32>
    %c0_11 = arith.constant 0 : index
    %c0_12 = arith.constant 0 : index
    %c0_13 = arith.constant 0 : index
    %37 = vector.load %arg2[%c0_11, %c0_12, %c0_13] : memref<2x32x96xf32, #tpu.memory_space<vmem>>, vector<1x32x96xf32>
    %38 = vector.shape_cast %37 : vector<1x32x96xf32> to vector<32x96xf32>
    %cst_14 = arith.constant dense<0.000000e+00> : vector<16x96xf32>
    %39 = tpu.matmul %0, %38, %cst_14 {dimension_numbers = #tpu.dot_dimension_numbers<[1], [0], [0], [1], [0, 0, 1, 1], [], []>} : vector<16x32xf32>, vector<32x96xf32>, vector<16x96xf32> -> vector<16x96xf32>
    %40 = vector.broadcast %29 : vector<1x96xf32> to vector<16x96xf32>
    %41 = arith.addf %39, %40 : vector<16x96xf32>
    %42 = vector.extract_strided_slice %41 {offsets = [0, 0], sizes = [16, 8], strides = [1, 1]} : vector<16x96xf32> to vector<16x8xf32>
    %43 = vector.extract_strided_slice %41 {offsets = [0, 8], sizes = [16, 8], strides = [1, 1]} : vector<16x96xf32> to vector<16x8xf32>
    %44 = vector.extract_strided_slice %41 {offsets = [0, 16], sizes = [16, 8], strides = [1, 1]} : vector<16x96xf32> to vector<16x8xf32>
    %45 = vector.extract_strided_slice %41 {offsets = [0, 24], sizes = [16, 8], strides = [1, 1]} : vector<16x96xf32> to vector<16x8xf32>
    %46 = vector.shape_cast %42 : vector<16x8xf32> to vector<1x16x8xf32>
    %47 = vector.shape_cast %43 : vector<16x8xf32> to vector<1x16x8xf32>
    %48 = vector.shape_cast %44 : vector<16x8xf32> to vector<1x16x8xf32>
    %49 = vector.shape_cast %45 : vector<16x8xf32> to vector<1x16x8xf32>
    %50 = tpu.concatenate %46, %47, %48, %49 in 0 : vector<1x16x8xf32>, vector<1x16x8xf32>, vector<1x16x8xf32>, vector<1x16x8xf32> -> vector<4x16x8xf32>
    %51 = vector.extract_strided_slice %41 {offsets = [0, 32], sizes = [16, 8], strides = [1, 1]} : vector<16x96xf32> to vector<16x8xf32>
    %52 = vector.extract_strided_slice %41 {offsets = [0, 40], sizes = [16, 8], strides = [1, 1]} : vector<16x96xf32> to vector<16x8xf32>
    %53 = vector.extract_strided_slice %41 {offsets = [0, 48], sizes = [16, 8], strides = [1, 1]} : vector<16x96xf32> to vector<16x8xf32>
    %54 = vector.extract_strided_slice %41 {offsets = [0, 56], sizes = [16, 8], strides = [1, 1]} : vector<16x96xf32> to vector<16x8xf32>
    %55 = vector.shape_cast %51 : vector<16x8xf32> to vector<1x16x8xf32>
    %56 = vector.shape_cast %52 : vector<16x8xf32> to vector<1x16x8xf32>
    %57 = vector.shape_cast %53 : vector<16x8xf32> to vector<1x16x8xf32>
    %58 = vector.shape_cast %54 : vector<16x8xf32> to vector<1x16x8xf32>
    %59 = tpu.concatenate %55, %56, %57, %58 in 0 : vector<1x16x8xf32>, vector<1x16x8xf32>, vector<1x16x8xf32>, vector<1x16x8xf32> -> vector<4x16x8xf32>
    %60 = vector.extract_strided_slice %41 {offsets = [0, 64], sizes = [16, 8], strides = [1, 1]} : vector<16x96xf32> to vector<16x8xf32>
    %61 = vector.extract_strided_slice %41 {offsets = [0, 72], sizes = [16, 8], strides = [1, 1]} : vector<16x96xf32> to vector<16x8xf32>
    %62 = vector.extract_strided_slice %41 {offsets = [0, 80], sizes = [16, 8], strides = [1, 1]} : vector<16x96xf32> to vector<16x8xf32>
    %63 = vector.extract_strided_slice %41 {offsets = [0, 88], sizes = [16, 8], strides = [1, 1]} : vector<16x96xf32> to vector<16x8xf32>
    %64 = vector.shape_cast %60 : vector<16x8xf32> to vector<1x16x8xf32>
    %65 = vector.shape_cast %61 : vector<16x8xf32> to vector<1x16x8xf32>
    %66 = vector.shape_cast %62 : vector<16x8xf32> to vector<1x16x8xf32>
    %67 = vector.shape_cast %63 : vector<16x8xf32> to vector<1x16x8xf32>
    %68 = tpu.concatenate %64, %65, %66, %67 in 0 : vector<1x16x8xf32>, vector<1x16x8xf32>, vector<1x16x8xf32>, vector<1x16x8xf32> -> vector<4x16x8xf32>
    "tpu.trace_start"() <{level = 10 : i32, message = "hqd,hkd->hqk"}> : () -> ()
    %cst_15 = arith.constant dense<0.000000e+00> : vector<4x16x16xf32>
    %69 = tpu.matmul %50, %59, %cst_15 {dimension_numbers = #tpu.dot_dimension_numbers<[2], [2], [1], [1], [0, 0, 0, 1, 1, 1], [0], [0]>} : vector<4x16x8xf32>, vector<4x16x8xf32>, vector<4x16x16xf32> -> vector<4x16x16xf32>
    "tpu.trace_stop"() : () -> ()
    %70 = vector.shape_cast %1 : vector<16x16xf32> to vector<1x16x16xf32>
    %71 = vector.broadcast %70 : vector<1x16x16xf32> to vector<4x16x16xf32>
    %72 = arith.addf %69, %71 : vector<4x16x16xf32>
    %cst_16 = arith.constant dense<0xFF800000> : vector<4x16xf32>
    %73 = vector.multi_reduction <maximumf>, %72, %cst_16 [2] : vector<4x16x16xf32> to vector<4x16xf32>
    %74 = vector.shape_cast %73 : vector<4x16xf32> to vector<4x16x1xf32>
    %75 = vector.broadcast %74 : vector<4x16x1xf32> to vector<4x16x16xf32>
    %76 = arith.subf %72, %75 : vector<4x16x16xf32>
    %77 = math.exp %76 : vector<4x16x16xf32>
    %cst_17 = arith.constant dense<0.000000e+00> : vector<4x16xf32>
    %78 = vector.multi_reduction <add>, %77, %cst_17 [2] : vector<4x16x16xf32> to vector<4x16xf32>
    %79 = vector.shape_cast %78 : vector<4x16xf32> to vector<4x16x1xf32>
    %80 = tpu.reciprocal %79 {approx = true} : vector<4x16x1xf32> -> vector<4x16x1xf32>
    %81 = vector.broadcast %80 : vector<4x16x1xf32> to vector<4x16x16xf32>
    %82 = arith.mulf %77, %81 : vector<4x16x16xf32>
    "tpu.trace_start"() <{level = 10 : i32, message = "hqk,hkd->hqd"}> : () -> ()
    %cst_18 = arith.constant dense<0.000000e+00> : vector<4x16x8xf32>
    %83 = tpu.matmul %82, %68, %cst_18 {dimension_numbers = #tpu.dot_dimension_numbers<[2], [1], [1], [2], [0, 0, 0, 1, 1, 2], [0], [0]>} : vector<4x16x16xf32>, vector<4x16x8xf32>, vector<4x16x8xf32> -> vector<4x16x8xf32>
    "tpu.trace_stop"() : () -> ()
    %c0_19 = arith.constant 0 : index
    %c0_20 = arith.constant 0 : index
    %c0_21 = arith.constant 0 : index
    %c0_22 = arith.constant 0 : index
    %84 = vector.load %arg3[%c0_19, %c0_20, %c0_21, %c0_22] : memref<2x4x8x32xf32, #tpu.memory_space<vmem>>, vector<1x4x8x32xf32>
    %85 = vector.shape_cast %84 : vector<1x4x8x32xf32> to vector<4x8x32xf32>
    "tpu.trace_start"() <{level = 10 : i32, message = "hne,hed->hnd"}> : () -> ()
    %cst_23 = arith.constant dense<0.000000e+00> : vector<4x16x32xf32>
    %86 = tpu.matmul %83, %85, %cst_23 {dimension_numbers = #tpu.dot_dimension_numbers<[2], [1], [1], [2], [0, 0, 0, 1, 1, 2], [0], [0]>} : vector<4x16x8xf32>, vector<4x8x32xf32>, vector<4x16x32xf32> -> vector<4x16x32xf32>
    "tpu.trace_stop"() : () -> ()
    %cst_24 = arith.constant dense<0.000000e+00> : vector<16x32xf32>
    %87 = vector.multi_reduction <add>, %86, %cst_24 [0] : vector<4x16x32xf32> to vector<16x32xf32>
    %88 = vector.broadcast %30 : vector<1x32xf32> to vector<16x32xf32>
    %89 = arith.addf %87, %88 : vector<16x32xf32>
    %90 = arith.addf %0, %89 : vector<16x32xf32>
    %cst_25 = arith.constant dense<0.000000e+00> : vector<16xf32>
    %91 = vector.multi_reduction <add>, %90, %cst_25 [1] : vector<16x32xf32> to vector<16xf32>
    %92 = vector.shape_cast %91 : vector<16xf32> to vector<16x1xf32>
    %cst_26 = arith.constant 3.200000e+01 : f32
    %93 = vector.broadcast %cst_26 : f32 to vector<16x1xf32>
    %94 = arith.divf %92, %93 : vector<16x1xf32>
    %95 = vector.broadcast %94 : vector<16x1xf32> to vector<16x32xf32>
    %96 = arith.subf %90, %95 : vector<16x32xf32>
    %97 = arith.mulf %96, %96 : vector<16x32xf32>
    %cst_27 = arith.constant dense<0.000000e+00> : vector<16xf32>
    %98 = vector.multi_reduction <add>, %97, %cst_27 [1] : vector<16x32xf32> to vector<16xf32>
    %99 = vector.shape_cast %98 : vector<16xf32> to vector<16x1xf32>
    %cst_28 = arith.constant 3.200000e+01 : f32
    %100 = vector.broadcast %cst_28 : f32 to vector<16x1xf32>
    %101 = arith.divf %99, %100 : vector<16x1xf32>
    %102 = vector.broadcast %94 : vector<16x1xf32> to vector<16x32xf32>
    %103 = arith.subf %90, %102 : vector<16x32xf32>
    %cst_29 = arith.constant 9.99999974E-6 : f32
    %104 = vector.broadcast %cst_29 : f32 to vector<16x1xf32>
    %105 = arith.addf %101, %104 : vector<16x1xf32>
    %106 = math.rsqrt %105 : vector<16x1xf32>
    %107 = vector.broadcast %106 : vector<16x1xf32> to vector<16x32xf32>
    %108 = arith.mulf %103, %107 : vector<16x32xf32>
    %109 = vector.broadcast %33 : vector<1x32xf32> to vector<16x32xf32>
    %110 = arith.mulf %108, %109 : vector<16x32xf32>
    %111 = vector.broadcast %34 : vector<1x32xf32> to vector<16x32xf32>
    %112 = arith.addf %110, %111 : vector<16x32xf32>
    %c0_30 = arith.constant 0 : index
    %c0_31 = arith.constant 0 : index
    %c0_32 = arith.constant 0 : index
    %113 = vector.load %arg4[%c0_30, %c0_31, %c0_32] : memref<2x32x64xf32, #tpu.memory_space<vmem>>, vector<1x32x64xf32>
    %114 = vector.shape_cast %113 : vector<1x32x64xf32> to vector<32x64xf32>
    %cst_33 = arith.constant dense<0.000000e+00> : vector<16x64xf32>
    %115 = tpu.matmul %112, %114, %cst_33 {dimension_numbers = #tpu.dot_dimension_numbers<[1], [0], [0], [1], [0, 0, 1, 1], [], []>} : vector<16x32xf32>, vector<32x64xf32>, vector<16x64xf32> -> vector<16x64xf32>
    %116 = vector.broadcast %31 : vector<1x64xf32> to vector<16x64xf32>
    %117 = arith.addf %115, %116 : vector<16x64xf32>
    %cst_34 = arith.constant 0.000000e+00 : f32
    %118 = vector.broadcast %cst_34 : f32 to vector<16x64xf32>
    %119 = arith.maximumf %117, %118 : vector<16x64xf32>
    %c0_35 = arith.constant 0 : index
    %c0_36 = arith.constant 0 : index
    %c0_37 = arith.constant 0 : index
    %120 = vector.load %arg5[%c0_35, %c0_36, %c0_37] : memref<2x64x32xf32, #tpu.memory_space<vmem>>, vector<1x64x32xf32>
    %121 = vector.shape_cast %120 : vector<1x64x32xf32> to vector<64x32xf32>
    %cst_38 = arith.constant dense<0.000000e+00> : vector<16x32xf32>
    %122 = tpu.matmul %119, %121, %cst_38 {dimension_numbers = #tpu.dot_dimension_numbers<[1], [0], [0], [1], [0, 0, 1, 1], [], []>} : vector<16x64xf32>, vector<64x32xf32>, vector<16x32xf32> -> vector<16x32xf32>
    %123 = vector.broadcast %32 : vector<1x32xf32> to vector<16x32xf32>
    %124 = arith.addf %122, %123 : vector<16x32xf32>
    %125 = arith.addf %112, %124 : vector<16x32xf32>
    %cst_39 = arith.constant dense<0.000000e+00> : vector<16xf32>
    %126 = vector.multi_reduction <add>, %125, %cst_39 [1] : vector<16x32xf32> to vector<16xf32>
    %127 = vector.shape_cast %126 : vector<16xf32> to vector<16x1xf32>
    %cst_40 = arith.constant 3.200000e+01 : f32
    %128 = vector.broadcast %cst_40 : f32 to vector<16x1xf32>
    %129 = arith.divf %127, %128 : vector<16x1xf32>
    %130 = vector.broadcast %129 : vector<16x1xf32> to vector<16x32xf32>
    %131 = arith.subf %125, %130 : vector<16x32xf32>
    %132 = arith.mulf %131, %131 : vector<16x32xf32>
    %cst_41 = arith.constant dense<0.000000e+00> : vector<16xf32>
    %133 = vector.multi_reduction <add>, %132, %cst_41 [1] : vector<16x32xf32> to vector<16xf32>
    %134 = vector.shape_cast %133 : vector<16xf32> to vector<16x1xf32>
    %cst_42 = arith.constant 3.200000e+01 : f32
    %135 = vector.broadcast %cst_42 : f32 to vector<16x1xf32>
    %136 = arith.divf %134, %135 : vector<16x1xf32>
    %137 = vector.broadcast %129 : vector<16x1xf32> to vector<16x32xf32>
    %138 = arith.subf %125, %137 : vector<16x32xf32>
    %cst_43 = arith.constant 9.99999974E-6 : f32
    %139 = vector.broadcast %cst_43 : f32 to vector<16x1xf32>
    %140 = arith.addf %136, %139 : vector<16x1xf32>
    %141 = math.rsqrt %140 : vector<16x1xf32>
    %142 = vector.broadcast %141 : vector<16x1xf32> to vector<16x32xf32>
    %143 = arith.mulf %138, %142 : vector<16x32xf32>
    %144 = vector.broadcast %35 : vector<1x32xf32> to vector<16x32xf32>
    %145 = arith.mulf %143, %144 : vector<16x32xf32>
    %146 = vector.broadcast %36 : vector<1x32xf32> to vector<16x32xf32>
    %147 = arith.addf %145, %146 : vector<16x32xf32>
    %148 = vector.extract_strided_slice %2 {offsets = [8, 0], sizes = [8, 128], strides = [1, 1]} : vector<24x128xf32> to vector<8x128xf32>
    %149 = vector.extract_strided_slice %148 {offsets = [0, 0], sizes = [1, 96], strides = [1, 1]} : vector<8x128xf32> to vector<1x96xf32>
    %150 = vector.extract_strided_slice %148 {offsets = [1, 0], sizes = [1, 32], strides = [1, 1]} : vector<8x128xf32> to vector<1x32xf32>
    %151 = vector.extract_strided_slice %148 {offsets = [2, 0], sizes = [1, 64], strides = [1, 1]} : vector<8x128xf32> to vector<1x64xf32>
    %152 = vector.extract_strided_slice %148 {offsets = [3, 0], sizes = [1, 32], strides = [1, 1]} : vector<8x128xf32> to vector<1x32xf32>
    %153 = vector.extract_strided_slice %148 {offsets = [4, 0], sizes = [1, 32], strides = [1, 1]} : vector<8x128xf32> to vector<1x32xf32>
    %154 = vector.extract_strided_slice %148 {offsets = [5, 0], sizes = [1, 32], strides = [1, 1]} : vector<8x128xf32> to vector<1x32xf32>
    %155 = vector.extract_strided_slice %148 {offsets = [6, 0], sizes = [1, 32], strides = [1, 1]} : vector<8x128xf32> to vector<1x32xf32>
    %156 = vector.extract_strided_slice %148 {offsets = [7, 0], sizes = [1, 32], strides = [1, 1]} : vector<8x128xf32> to vector<1x32xf32>
    %c1 = arith.constant 1 : index
    %c0_44 = arith.constant 0 : index
    %c0_45 = arith.constant 0 : index
    %157 = vector.load %arg2[%c1, %c0_44, %c0_45] : memref<2x32x96xf32, #tpu.memory_space<vmem>>, vector<1x32x96xf32>
    %158 = vector.shape_cast %157 : vector<1x32x96xf32> to vector<32x96xf32>
    %cst_46 = arith.constant dense<0.000000e+00> : vector<16x96xf32>
    %159 = tpu.matmul %147, %158, %cst_46 {dimension_numbers = #tpu.dot_dimension_numbers<[1], [0], [0], [1], [0, 0, 1, 1], [], []>} : vector<16x32xf32>, vector<32x96xf32>, vector<16x96xf32> -> vector<16x96xf32>
    %160 = vector.broadcast %149 : vector<1x96xf32> to vector<16x96xf32>
    %161 = arith.addf %159, %160 : vector<16x96xf32>
    %162 = vector.extract_strided_slice %161 {offsets = [0, 0], sizes = [16, 8], strides = [1, 1]} : vector<16x96xf32> to vector<16x8xf32>
    %163 = vector.extract_strided_slice %161 {offsets = [0, 8], sizes = [16, 8], strides = [1, 1]} : vector<16x96xf32> to vector<16x8xf32>
    %164 = vector.extract_strided_slice %161 {offsets = [0, 16], sizes = [16, 8], strides = [1, 1]} : vector<16x96xf32> to vector<16x8xf32>
    %165 = vector.extract_strided_slice %161 {offsets = [0, 24], sizes = [16, 8], strides = [1, 1]} : vector<16x96xf32> to vector<16x8xf32>
    %166 = vector.shape_cast %162 : vector<16x8xf32> to vector<1x16x8xf32>
    %167 = vector.shape_cast %163 : vector<16x8xf32> to vector<1x16x8xf32>
    %168 = vector.shape_cast %164 : vector<16x8xf32> to vector<1x16x8xf32>
    %169 = vector.shape_cast %165 : vector<16x8xf32> to vector<1x16x8xf32>
    %170 = tpu.concatenate %166, %167, %168, %169 in 0 : vector<1x16x8xf32>, vector<1x16x8xf32>, vector<1x16x8xf32>, vector<1x16x8xf32> -> vector<4x16x8xf32>
    %171 = vector.extract_strided_slice %161 {offsets = [0, 32], sizes = [16, 8], strides = [1, 1]} : vector<16x96xf32> to vector<16x8xf32>
    %172 = vector.extract_strided_slice %161 {offsets = [0, 40], sizes = [16, 8], strides = [1, 1]} : vector<16x96xf32> to vector<16x8xf32>
    %173 = vector.extract_strided_slice %161 {offsets = [0, 48], sizes = [16, 8], strides = [1, 1]} : vector<16x96xf32> to vector<16x8xf32>
    %174 = vector.extract_strided_slice %161 {offsets = [0, 56], sizes = [16, 8], strides = [1, 1]} : vector<16x96xf32> to vector<16x8xf32>
    %175 = vector.shape_cast %171 : vector<16x8xf32> to vector<1x16x8xf32>
    %176 = vector.shape_cast %172 : vector<16x8xf32> to vector<1x16x8xf32>
    %177 = vector.shape_cast %173 : vector<16x8xf32> to vector<1x16x8xf32>
    %178 = vector.shape_cast %174 : vector<16x8xf32> to vector<1x16x8xf32>
    %179 = tpu.concatenate %175, %176, %177, %178 in 0 : vector<1x16x8xf32>, vector<1x16x8xf32>, vector<1x16x8xf32>, vector<1x16x8xf32> -> vector<4x16x8xf32>
    %180 = vector.extract_strided_slice %161 {offsets = [0, 64], sizes = [16, 8], strides = [1, 1]} : vector<16x96xf32> to vector<16x8xf32>
    %181 = vector.extract_strided_slice %161 {offsets = [0, 72], sizes = [16, 8], strides = [1, 1]} : vector<16x96xf32> to vector<16x8xf32>
    %182 = vector.extract_strided_slice %161 {offsets = [0, 80], sizes = [16, 8], strides = [1, 1]} : vector<16x96xf32> to vector<16x8xf32>
    %183 = vector.extract_strided_slice %161 {offsets = [0, 88], sizes = [16, 8], strides = [1, 1]} : vector<16x96xf32> to vector<16x8xf32>
    %184 = vector.shape_cast %180 : vector<16x8xf32> to vector<1x16x8xf32>
    %185 = vector.shape_cast %181 : vector<16x8xf32> to vector<1x16x8xf32>
    %186 = vector.shape_cast %182 : vector<16x8xf32> to vector<1x16x8xf32>
    %187 = vector.shape_cast %183 : vector<16x8xf32> to vector<1x16x8xf32>
    %188 = tpu.concatenate %184, %185, %186, %187 in 0 : vector<1x16x8xf32>, vector<1x16x8xf32>, vector<1x16x8xf32>, vector<1x16x8xf32> -> vector<4x16x8xf32>
    "tpu.trace_start"() <{level = 10 : i32, message = "hqd,hkd->hqk"}> : () -> ()
    %cst_47 = arith.constant dense<0.000000e+00> : vector<4x16x16xf32>
    %189 = tpu.matmul %170, %179, %cst_47 {dimension_numbers = #tpu.dot_dimension_numbers<[2], [2], [1], [1], [0, 0, 0, 1, 1, 1], [0], [0]>} : vector<4x16x8xf32>, vector<4x16x8xf32>, vector<4x16x16xf32> -> vector<4x16x16xf32>
    "tpu.trace_stop"() : () -> ()
    %190 = vector.shape_cast %1 : vector<16x16xf32> to vector<1x16x16xf32>
    %191 = vector.broadcast %190 : vector<1x16x16xf32> to vector<4x16x16xf32>
    %192 = arith.addf %189, %191 : vector<4x16x16xf32>
    %cst_48 = arith.constant dense<0xFF800000> : vector<4x16xf32>
    %193 = vector.multi_reduction <maximumf>, %192, %cst_48 [2] : vector<4x16x16xf32> to vector<4x16xf32>
    %194 = vector.shape_cast %193 : vector<4x16xf32> to vector<4x16x1xf32>
    %195 = vector.broadcast %194 : vector<4x16x1xf32> to vector<4x16x16xf32>
    %196 = arith.subf %192, %195 : vector<4x16x16xf32>
    %197 = math.exp %196 : vector<4x16x16xf32>
    %cst_49 = arith.constant dense<0.000000e+00> : vector<4x16xf32>
    %198 = vector.multi_reduction <add>, %197, %cst_49 [2] : vector<4x16x16xf32> to vector<4x16xf32>
    %199 = vector.shape_cast %198 : vector<4x16xf32> to vector<4x16x1xf32>
    %200 = tpu.reciprocal %199 {approx = true} : vector<4x16x1xf32> -> vector<4x16x1xf32>
    %201 = vector.broadcast %200 : vector<4x16x1xf32> to vector<4x16x16xf32>
    %202 = arith.mulf %197, %201 : vector<4x16x16xf32>
    "tpu.trace_start"() <{level = 10 : i32, message = "hqk,hkd->hqd"}> : () -> ()
    %cst_50 = arith.constant dense<0.000000e+00> : vector<4x16x8xf32>
    %203 = tpu.matmul %202, %188, %cst_50 {dimension_numbers = #tpu.dot_dimension_numbers<[2], [1], [1], [2], [0, 0, 0, 1, 1, 2], [0], [0]>} : vector<4x16x16xf32>, vector<4x16x8xf32>, vector<4x16x8xf32> -> vector<4x16x8xf32>
    "tpu.trace_stop"() : () -> ()
    %c1_51 = arith.constant 1 : index
    %c0_52 = arith.constant 0 : index
    %c0_53 = arith.constant 0 : index
    %c0_54 = arith.constant 0 : index
    %204 = vector.load %arg3[%c1_51, %c0_52, %c0_53, %c0_54] : memref<2x4x8x32xf32, #tpu.memory_space<vmem>>, vector<1x4x8x32xf32>
    %205 = vector.shape_cast %204 : vector<1x4x8x32xf32> to vector<4x8x32xf32>
    "tpu.trace_start"() <{level = 10 : i32, message = "hne,hed->hnd"}> : () -> ()
    %cst_55 = arith.constant dense<0.000000e+00> : vector<4x16x32xf32>
    %206 = tpu.matmul %203, %205, %cst_55 {dimension_numbers = #tpu.dot_dimension_numbers<[2], [1], [1], [2], [0, 0, 0, 1, 1, 2], [0], [0]>} : vector<4x16x8xf32>, vector<4x8x32xf32>, vector<4x16x32xf32> -> vector<4x16x32xf32>
    "tpu.trace_stop"() : () -> ()
    %cst_56 = arith.constant dense<0.000000e+00> : vector<16x32xf32>
    %207 = vector.multi_reduction <add>, %206, %cst_56 [0] : vector<4x16x32xf32> to vector<16x32xf32>
    %208 = vector.broadcast %150 : vector<1x32xf32> to vector<16x32xf32>
    %209 = arith.addf %207, %208 : vector<16x32xf32>
    %210 = arith.addf %147, %209 : vector<16x32xf32>
    %cst_57 = arith.constant dense<0.000000e+00> : vector<16xf32>
    %211 = vector.multi_reduction <add>, %210, %cst_57 [1] : vector<16x32xf32> to vector<16xf32>
    %212 = vector.shape_cast %211 : vector<16xf32> to vector<16x1xf32>
    %cst_58 = arith.constant 3.200000e+01 : f32
    %213 = vector.broadcast %cst_58 : f32 to vector<16x1xf32>
    %214 = arith.divf %212, %213 : vector<16x1xf32>
    %215 = vector.broadcast %214 : vector<16x1xf32> to vector<16x32xf32>
    %216 = arith.subf %210, %215 : vector<16x32xf32>
    %217 = arith.mulf %216, %216 : vector<16x32xf32>
    %cst_59 = arith.constant dense<0.000000e+00> : vector<16xf32>
    %218 = vector.multi_reduction <add>, %217, %cst_59 [1] : vector<16x32xf32> to vector<16xf32>
    %219 = vector.shape_cast %218 : vector<16xf32> to vector<16x1xf32>
    %cst_60 = arith.constant 3.200000e+01 : f32
    %220 = vector.broadcast %cst_60 : f32 to vector<16x1xf32>
    %221 = arith.divf %219, %220 : vector<16x1xf32>
    %222 = vector.broadcast %214 : vector<16x1xf32> to vector<16x32xf32>
    %223 = arith.subf %210, %222 : vector<16x32xf32>
    %cst_61 = arith.constant 9.99999974E-6 : f32
    %224 = vector.broadcast %cst_61 : f32 to vector<16x1xf32>
    %225 = arith.addf %221, %224 : vector<16x1xf32>
    %226 = math.rsqrt %225 : vector<16x1xf32>
    %227 = vector.broadcast %226 : vector<16x1xf32> to vector<16x32xf32>
    %228 = arith.mulf %223, %227 : vector<16x32xf32>
    %229 = vector.broadcast %153 : vector<1x32xf32> to vector<16x32xf32>
    %230 = arith.mulf %228, %229 : vector<16x32xf32>
    %231 = vector.broadcast %154 : vector<1x32xf32> to vector<16x32xf32>
    %232 = arith.addf %230, %231 : vector<16x32xf32>
    %c1_62 = arith.constant 1 : index
    %c0_63 = arith.constant 0 : index
    %c0_64 = arith.constant 0 : index
    %233 = vector.load %arg4[%c1_62, %c0_63, %c0_64] : memref<2x32x64xf32, #tpu.memory_space<vmem>>, vector<1x32x64xf32>
    %234 = vector.shape_cast %233 : vector<1x32x64xf32> to vector<32x64xf32>
    %cst_65 = arith.constant dense<0.000000e+00> : vector<16x64xf32>
    %235 = tpu.matmul %232, %234, %cst_65 {dimension_numbers = #tpu.dot_dimension_numbers<[1], [0], [0], [1], [0, 0, 1, 1], [], []>} : vector<16x32xf32>, vector<32x64xf32>, vector<16x64xf32> -> vector<16x64xf32>
    %236 = vector.broadcast %151 : vector<1x64xf32> to vector<16x64xf32>
    %237 = arith.addf %235, %236 : vector<16x64xf32>
    %cst_66 = arith.constant 0.000000e+00 : f32
    %238 = vector.broadcast %cst_66 : f32 to vector<16x64xf32>
    %239 = arith.maximumf %237, %238 : vector<16x64xf32>
    %c1_67 = arith.constant 1 : index
    %c0_68 = arith.constant 0 : index
    %c0_69 = arith.constant 0 : index
    %240 = vector.load %arg5[%c1_67, %c0_68, %c0_69] : memref<2x64x32xf32, #tpu.memory_space<vmem>>, vector<1x64x32xf32>
    %241 = vector.shape_cast %240 : vector<1x64x32xf32> to vector<64x32xf32>
    %cst_70 = arith.constant dense<0.000000e+00> : vector<16x32xf32>
    %242 = tpu.matmul %239, %241, %cst_70 {dimension_numbers = #tpu.dot_dimension_numbers<[1], [0], [0], [1], [0, 0, 1, 1], [], []>} : vector<16x64xf32>, vector<64x32xf32>, vector<16x32xf32> -> vector<16x32xf32>
    %243 = vector.broadcast %152 : vector<1x32xf32> to vector<16x32xf32>
    %244 = arith.addf %242, %243 : vector<16x32xf32>
    %245 = arith.addf %232, %244 : vector<16x32xf32>
    %cst_71 = arith.constant dense<0.000000e+00> : vector<16xf32>
    %246 = vector.multi_reduction <add>, %245, %cst_71 [1] : vector<16x32xf32> to vector<16xf32>
    %247 = vector.shape_cast %246 : vector<16xf32> to vector<16x1xf32>
    %cst_72 = arith.constant 3.200000e+01 : f32
    %248 = vector.broadcast %cst_72 : f32 to vector<16x1xf32>
    %249 = arith.divf %247, %248 : vector<16x1xf32>
    %250 = vector.broadcast %249 : vector<16x1xf32> to vector<16x32xf32>
    %251 = arith.subf %245, %250 : vector<16x32xf32>
    %252 = arith.mulf %251, %251 : vector<16x32xf32>
    %cst_73 = arith.constant dense<0.000000e+00> : vector<16xf32>
    %253 = vector.multi_reduction <add>, %252, %cst_73 [1] : vector<16x32xf32> to vector<16xf32>
    %254 = vector.shape_cast %253 : vector<16xf32> to vector<16x1xf32>
    %cst_74 = arith.constant 3.200000e+01 : f32
    %255 = vector.broadcast %cst_74 : f32 to vector<16x1xf32>
    %256 = arith.divf %254, %255 : vector<16x1xf32>
    %257 = vector.broadcast %249 : vector<16x1xf32> to vector<16x32xf32>
    %258 = arith.subf %245, %257 : vector<16x32xf32>
    %cst_75 = arith.constant 9.99999974E-6 : f32
    %259 = vector.broadcast %cst_75 : f32 to vector<16x1xf32>
    %260 = arith.addf %256, %259 : vector<16x1xf32>
    %261 = math.rsqrt %260 : vector<16x1xf32>
    %262 = vector.broadcast %261 : vector<16x1xf32> to vector<16x32xf32>
    %263 = arith.mulf %258, %262 : vector<16x32xf32>
    %264 = vector.broadcast %155 : vector<1x32xf32> to vector<16x32xf32>
    %265 = arith.mulf %263, %264 : vector<16x32xf32>
    %266 = vector.broadcast %156 : vector<1x32xf32> to vector<16x32xf32>
    %267 = arith.addf %265, %266 : vector<16x32xf32>
    %268 = vector.extract_strided_slice %2 {offsets = [16, 0], sizes = [1, 32], strides = [1, 1]} : vector<24x128xf32> to vector<1x32xf32>
    %269 = vector.extract_strided_slice %2 {offsets = [17, 0], sizes = [1, 32], strides = [1, 1]} : vector<24x128xf32> to vector<1x32xf32>
    %cst_76 = arith.constant dense<0.000000e+00> : vector<16xf32>
    %270 = vector.multi_reduction <add>, %267, %cst_76 [1] : vector<16x32xf32> to vector<16xf32>
    %271 = vector.shape_cast %270 : vector<16xf32> to vector<16x1xf32>
    %cst_77 = arith.constant 3.200000e+01 : f32
    %272 = vector.broadcast %cst_77 : f32 to vector<16x1xf32>
    %273 = arith.divf %271, %272 : vector<16x1xf32>
    %274 = vector.broadcast %273 : vector<16x1xf32> to vector<16x32xf32>
    %275 = arith.subf %267, %274 : vector<16x32xf32>
    %276 = arith.mulf %275, %275 : vector<16x32xf32>
    %cst_78 = arith.constant dense<0.000000e+00> : vector<16xf32>
    %277 = vector.multi_reduction <add>, %276, %cst_78 [1] : vector<16x32xf32> to vector<16xf32>
    %278 = vector.shape_cast %277 : vector<16xf32> to vector<16x1xf32>
    %cst_79 = arith.constant 3.200000e+01 : f32
    %279 = vector.broadcast %cst_79 : f32 to vector<16x1xf32>
    %280 = arith.divf %278, %279 : vector<16x1xf32>
    %281 = vector.broadcast %273 : vector<16x1xf32> to vector<16x32xf32>
    %282 = arith.subf %267, %281 : vector<16x32xf32>
    %cst_80 = arith.constant 9.99999974E-6 : f32
    %283 = vector.broadcast %cst_80 : f32 to vector<16x1xf32>
    %284 = arith.addf %280, %283 : vector<16x1xf32>
    %285 = math.rsqrt %284 : vector<16x1xf32>
    %286 = vector.broadcast %285 : vector<16x1xf32> to vector<16x32xf32>
    %287 = arith.mulf %282, %286 : vector<16x32xf32>
    %288 = vector.broadcast %268 : vector<1x32xf32> to vector<16x32xf32>
    %289 = arith.mulf %287, %288 : vector<16x32xf32>
    %290 = vector.broadcast %269 : vector<1x32xf32> to vector<16x32xf32>
    %291 = arith.addf %289, %290 : vector<16x32xf32>
    %c0_81 = arith.constant 0 : index
    %c0_82 = arith.constant 0 : index
    %292 = vector.load %arg8[%c0_81, %c0_82] : memref<16x32xf32, #tpu.memory_space<vmem>>, vector<16x32xf32>
    tpu.vector_store %arg8[%c0_81, %c0_82], %291 {strides = array<i32>} : memref<16x32xf32, #tpu.memory_space<vmem>>, vector<16x32xf32>,
    return
  }
}

</mosaic_0001>

<bundles_post_ra>
// kernel: tfm_layer_forward.1
= control target key start
LH: loop header
LB: loop body
LE: loop exit
PB: predicated region body
PF: predicated region fallthrough
CT: control target
= control target key end

     0   :  { %14 = vsyncpa [#allocation3], 0  ;;  %s2618_s0 = inlined_call_operand.hbm [shape: f32[16,32], index: 0, kind: input, shape index: {}]   ;;  %s2619_s1 = inlined_call_operand.vmem [shape: f32[16,16], index: 1, kind: input, shape index: {}]   ;;  %s2620_s2 = inlined_call_operand.vmem [shape: f32[2,32,96], index: 2, kind: input, shape index: {}]   ;;  %s2621_s3 = inlined_call_operand.vmem [shape: f32[2,4,8,32], index: 3, kind: input, shape index: {}]   ;;  %s2622_s4 = inlined_call_operand.vmem [shape: f32[2,32,64], index: 4, kind: input, shape index: {}]   ;;  %s2623_s5 = inlined_call_operand.vmem [shape: f32[2,64,32], index: 5, kind: input, shape index: {}]   ;;  %s2624_s6 = inlined_call_operand.vmem [shape: f32[24,128], index: 6, kind: input, shape index: {}]   ;;  %s2625_s7 = inlined_call_operand.hbm [shape: f32[16,32], index: 7, kind: output, shape index: {0}]   ;;  %s2626_s8 = inlined_call_operand.hbm [shape: f32[16,32], index: 8, kind: output, shape index: {1}]  }
   0x1   :  { %15 = vsyncpa [#allocation4], 0 }
   0x2   :  { %16 = vsyncpa [#allocation7], 0  ;;  %s21_s29 = sshll.u32 %s2618_s0, 4  ;;  %s1994_s30 = smov [#allocation2]   ;;  %s22_s29 = int_to_ptr.hbm [resolvable:$true] %s21_s29 }
   0x3   :  { %s23_s9 = sshll.u32 %s1994_s30, 4  ;;  %s1995_s10 = smov 128   ;;  %s24_s9 = int_to_ptr.vmem [resolvable:$true] %s23_s9 }
   0x4   :  { %s1996_s11 = smov 8  }
   0x5   :  { %29 = dma.hbm_to_vmem [thread:$0]  %s22_s29, 256, %s24_s9, [#allocation3], %s1995_s10, %s1995_s10, %s1996_s11  }
   0x6   :  { %1988 = dma.done.wait [#allocation3], 256  }
   0x7   :  { %1989 = vsyncadd [#allocation3], 4294967040  ;;  %v116_v0 = vld [vmem:[%s2620_s2 + $0x18] sm:$0xff]  ;;  %v115_v1 = vld [vmem:[%s2620_s2 + $0x10] sm:$0xff]  ;;  %vm53_vm0 = vcmask 261120   ;;  %s1997_s21 = smov 120  }
   0x8   :  { %136 = vmatpush.msra.mxu0 %v116_v0  ;;  %1767 = vmatpush.msra.mxu2 %v116_v0  ;;  %v114_v2 = vld [vmem:[%s2620_s2 + $0x8] sm:$0xff]  ;;  %v113_v3 = vld [vmem:[%s2620_s2] sm:$0xff]  ;;  %s1998_s22 = smov 104   ;;  %s1999_s23 = smov 112   ;;  %vm165_vm1 = vcmask 64512   ;;  %vm302_vm2 = vcmask 130048  }
   0x9   :  { %v2068_v4 = vld [vmem:[#allocation2] sm:$0xff]  ;;  %v2070_v5 = vld [vmem:[#allocation2 + $0x8] sm:$0xff]  ;;  %s2000_s24 = smov 96   ;;  %vm765_vm10 = vcmask 523264   ;;  %s1640_s20 = sshll.u32 %s2625_s7, 4  ;;  %s1641_s20 = int_to_ptr.hbm [resolvable:$true] %s1640_s20 }
   0xa   :  { %137 = vmatpush.msra.mxu0 %v115_v1  ;;  %1768 = vmatpush.msra.mxu2 %v115_v1  ;;  %v2079_v6 = vld [vmem:[%s2624_s6] sm:$0xff]  ;;  %v2162_v30 = vld [vmem:[%s2619_s1 + $0x8] sm:$0xff]  ;;  %s2004_s7 = smov [#allocation6]   ;;  %s1653_s28 = sshll.u32 %s2626_s8, 4  ;;  %s1654_s28 = int_to_ptr.hbm [resolvable:$true] %s1653_s28 }
   0xb   :  { %v117_v7 = vperm.slane %v2079_v6, 0  ;;  %v2155_v26 = vld [vmem:[%s2619_s1] sm:$0xff]  ;;  %s2001_s1 = smov 64   ;;  %s1651_s25 = sshll.u32 %s2004_s7, 4  ;;  %s1652_s25 = int_to_ptr.vmem [resolvable:$true] %s1651_s25 }
   0xc   :  { %138 = vmatpush.msra.mxu0 %v114_v2  ;;  %1769 = vmatpush.msra.mxu2 %v114_v2 }
   0xe   :  { %139 = vmatpush.msra.mxu0 %v113_v3  ;;  %1770 = vmatpush.msra.mxu2 %v113_v3 }
   0xf   :  { %1671 = vmatmul.msk.f32.vlgmr.msra.gmra.mxu0 %vm53_vm0, %v2068_v4  ;;  %1672 = vmatmul.msk.f32.vlgmr.msra.gmra.mxu2 %vm53_vm0, %v2070_v5 }
  0x8c   :  { %v141_v8 = vpop.f32.mrf.mxu0 }
  0x8d   :  { %v2082_v9 = vadd.f32 %v141_v8, %v117_v7 }
  0x8f   :  { %149 = vrot.lane.b32.xlu1 %v2082_v9, %s1997_s21 }
  0x92   :  { %v144_v10 = vpop.f32.mrf.mxu2 }
  0x93   :  { %v2086_v11 = vadd.f32 %v144_v10, %v117_v7 }
  0x95   :  { %159 = vrot.lane.b32.xlu2 %v2086_v11, %s1998_s22  ;;  %151 = vrot.lane.b32.xlu0 %v2086_v11, %s1997_s21 }
  0x97   :  { %153 = vrot.lane.b32.xlu1 %v2082_v9, %s1999_s23 }
  0x9d   :  { %155 = vrot.lane.b32.xlu0 %v2086_v11, %s1999_s23  ;;  %157 = vrot.lane.b32.xlu2 %v2082_v9, %s1998_s22 }
  0x9f   :  { %161 = vrot.lane.b32.xlu1 %v2082_v9, %s2000_s24 }
  0xa5   :  { %163 = vrot.lane.b32.xlu0 %v2086_v11, %s2000_s24 }
  0xef   :  { %v2102_v12 = vpop.permute.xlu2 %159 }
  0xf7   :  { %v2112_v15 = vpop.permute.xlu2 %157 }
 0x101   :  { %v2104_v13 = vpop.permute.xlu1 %149 }
 0x102   :  { %197 = vrot.lane.b32.xlu1 %v2104_v13, %s2000_s24 }
 0x107   :  { %v2108_v14 = vpop.permute.xlu0 %151 }
 0x108   :  { %199 = vrot.lane.b32.xlu2 %v2108_v14, %s2000_s24  ;;  %v1784_v52 = vpack.i.bf16 %v2104_v13, %v2108_v14 }
 0x109   :  { %v2116_v16 = vpop.permute.xlu1 %153 }
 0x10a   :  { %267 = vrot.lane.b32.xlu1 %v2112_v15, %s2000_s24 }
 0x10f   :  { %v2118_v17 = vpop.permute.xlu0 %155 }
 0x110   :  { %234 = vrot.lane.b32.xlu0 %v2118_v17, %s2000_s24  ;;  %232 = vrot.lane.b32.xlu2 %v2116_v16, %s2000_s24 }
 0x111   :  { %v162_v19 = vpop.permute.xlu1 %161 }
 0x117   :  { %v164_v18 = vpop.permute.xlu0 %163 }
 0x118   :  { %269 = vrot.lane.b32.xlu0 %v2102_v12, %s2000_s24  ;;  %1673 = vmatpush.xpose.msk.msra.mxu1 %vm165_vm1, %v164_v18 }
 0x119   :  { %1771 = vmatpush.xpose.msk.msra.mxu3 %vm165_vm1, %v164_v18  ;;  %v1794_v18 = vpack.i.bf16 %v2082_v9, %v2086_v11 }
 0x11c   :  { %1674 = vmatpush.xpose.msk.msra.mxu1 %vm165_vm1, %v162_v19 }
 0x11d   :  { %1772 = vmatpush.xpose.msk.msra.mxu3 %vm165_vm1, %v162_v19 }
 0x11f   :  { %1675 = vmatmul.msk.f32.vlgmr.msra.gmra.mxu1 %vm165_vm1, %v2082_v9 }
 0x120   :  { %1676 = vmatmul.msk.f32.vlgmr.msra.gmra.mxu3 %vm165_vm1, %v2086_v11 }
 0x162   :  { %v200_v20 = vpop.permute.xlu2 %199 }
 0x163   :  { %1677 = vmatpush.xpose.msk.msrb.mxu2 %vm165_vm1, %v200_v20 }
 0x16a   :  { %v233_v23 = vpop.permute.xlu2 %232 }
 0x174   :  { %v198_v21 = vpop.permute.xlu1 %197 }
 0x175   :  { %1678 = vmatpush.xpose.msk.msrb.mxu2 %vm165_vm1, %v198_v21 }
 0x178   :  { %1679 = vmatmul.msk.f32.vlgmr.msrb.gmra.mxu2 %vm165_vm1, %v2104_v13 }
 0x17c   :  { %v268_v25 = vpop.permute.xlu1 %267 }
 0x180   :  { %1680 = vmatmul.msk.f32.gmra.mxu2 %vm165_vm1, %v2108_v14 }
 0x182   :  { %v235_v22 = vpop.permute.xlu0 %234 }
 0x183   :  { %1681 = vmatpush.xpose.msk.msrb.mxu3 %vm165_vm1, %v235_v22 }
 0x187   :  { %1682 = vmatpush.xpose.msk.msrb.mxu3 %vm165_vm1, %v233_v23 }
 0x18a   :  { %v270_v24 = vpop.permute.xlu0 %269  ;;  %1683 = vmatmul.msk.f32.vlgmr.msrb.gmra.mxu3 %vm165_vm1, %v2116_v16 }
 0x18b   :  { %1685 = vmatpush.xpose.msk.msrb.mxu0 %vm165_vm1, %v270_v24 }
 0x18f   :  { %1686 = vmatpush.xpose.msk.msrb.mxu0 %vm165_vm1, %v268_v25 }
 0x192   :  { %1684 = vmatmul.msk.f32.gmra.mxu3 %vm165_vm1, %v2118_v17  ;;  %1687 = vmatmul.msk.f32.vlgmr.msrb.gmra.mxu0 %vm165_vm1, %v2112_v15 }
 0x19a   :  { %1688 = vmatmul.msk.f32.gmra.mxu0 %vm165_vm1, %v2102_v12 }
 0x19c   :  { %v191_v27 = vpop.f32.mrf.mxu1 }
 0x19d   :  { %v192_v28 = vadd.f32 %v191_v27, %v2155_v26  ;;  %v1789_v27 = vpack.i.bf16 %v2116_v16, %v2118_v17 }
 0x19f   :  { %v303_v29 = vsel %vm302_vm2, %v192_v28, -inf }
 0x1a0   :  { %304 = vmax.xlane.f32.xlu2 %v303_v29 }
 0x1a3   :  { %v194_v31 = vpop.f32.mrf.mxu3 }
 0x1a4   :  { %v2165_v32 = vadd.f32 %v194_v31, %v2162_v30 }
 0x1a6   :  { %v306_v33 = vsel %vm302_vm2, %v2165_v32, -inf }
 0x1a7   :  { %307 = vmax.xlane.f32.xlu1 %v306_v33 }
 0x1fb   :  { %v226_v34 = vpop.f32.mrf.mxu2 }
 0x1fc   :  { %v227_v35 = vadd.f32 %v226_v34, %v2155_v26 }
 0x1fe   :  { %v309_v36 = vsel %vm302_vm2, %v227_v35, -inf }
 0x1ff   :  { %310 = vmax.xlane.f32.xlu2 %v309_v36 }
 0x203   :  { %v229_v37 = vpop.f32.mrf.mxu2 }
 0x204   :  { %v2172_v38 = vadd.f32 %v229_v37, %v2162_v30 }
 0x206   :  { %v312_v39 = vsel %vm302_vm2, %v2172_v38, -inf }
 0x207   :  { %313 = vmax.xlane.f32.xlu1 %v312_v39 }
 0x20d   :  { %v261_v42 = vpop.f32.mrf.mxu3 }
 0x20e   :  { %v262_v44 = vadd.f32 %v261_v42, %v2155_v26 }
 0x20f   :  { %v296_v40 = vpop.f32.mrf.mxu0 }
 0x210   :  { %v297_v41 = vadd.f32 %v296_v40, %v2155_v26  ;;  %v315_v48 = vsel %vm302_vm2, %v262_v44, -inf }
 0x212   :  { %v321_v43 = vsel %vm302_vm2, %v297_v41, -inf }
 0x213   :  { %322 = vmax.xlane.f32.xlu0 %v321_v43  ;;  %v305_v53 = vpop.xlane.xlu2 %304 }
 0x214   :  { %v327_v56 = vsub.f32 %v192_v28, %v305_v53 }
 0x215   :  { %v264_v49 = vpop.f32.mrf.mxu3 }
 0x216   :  { %v265_v50 = vadd.f32 %v264_v49, %v2162_v30  ;;  %v335_v58 = vmul.f32 1.442695, %v327_v56 }
 0x217   :  { %v299_v45 = vpop.f32.mrf.mxu0 }
 0x218   :  { %v2180_v46 = vadd.f32 %v299_v45, %v2162_v30  ;;  %v318_v51 = vsel %vm302_vm2, %v265_v50, -inf }
 0x21a   :  { %v324_v47 = vsel %vm302_vm2, %v2180_v46, -inf  ;;  %v308_v24 = vpop.xlane.xlu1 %307 }
 0x21b   :  { %325 = vmax.xlane.f32.xlu2 %v324_v47  ;;  %316 = vmax.xlane.f32.xlu0 %v315_v48  ;;  %v328_v36 = vsub.f32 %v2165_v32, %v308_v24  ;;  %v534_v24 = vld [vmem:[%s2621_s3 + $0x18] sm:$0xff] }
 0x21d   :  { %v337_v16 = vmul.f32 1.442695, %v328_v36 }
 0x223   :  { %319 = vmax.xlane.f32.xlu2 %v318_v51 }
 0x23b   :  { %1785 = vrot.lane.b32.xlu2 %v1784_v52, %s2001_s1 }
 0x272   :  { %v311_v54 = vpop.xlane.xlu2 %310 }
 0x273   :  { %v329_v55 = vsub.f32 %v227_v35, %v311_v54 }
 0x275   :  { %v339_v57 = vmul.f32 1.442695, %v329_v55 }
 0x277   :  { %1824 = vpow2.f32 %v339_v57 }
 0x278   :  { %1826 = vpow2.f32 %v335_v58 }
 0x27a   :  { %v314_v25 = vpop.xlane.xlu1 %313 }
 0x27b   :  { %v330_v28 = vsub.f32 %v2172_v38, %v314_v25  ;;  %v1799_v38 = vpack.i.bf16 %v2112_v15, %v2102_v12 }
 0x27d   :  { %v1825_v59 = vpop.eup %1824  ;;  %v341_v9 = vmul.f32 1.442695, %v330_v28 }
 0x27e   :  { %v357_v60 = vsel %vm302_vm2, %v1825_v59, 0.0  ;;  %v2191_v61 = vpop.eup %1826 }
 0x27f   :  { %358 = vadd.xlane.f32.xlu0 %v357_v60  ;;  %v351_v63 = vsel %vm302_vm2, %v2191_v61, 0.0 }
 0x286   :  { %v323_v62 = vpop.xlane.xlu0 %322 }
 0x287   :  { %v333_v0 = vsub.f32 %v297_v41, %v323_v62  ;;  %352 = vadd.xlane.f32.xlu0 %v351_v63 }
 0x289   :  { %v347_v1 = vmul.f32 1.442695, %v333_v0 }
 0x28b   :  { %1828 = vpow2.f32 %v347_v1 }
 0x28e   :  { %v326_v2 = vpop.xlane.xlu2 %325  ;;  %v317_v3 = vpop.xlane.xlu0 %316 }
 0x28f   :  { %v331_v7 = vsub.f32 %v262_v44, %v317_v3  ;;  %v334_v41 = vsub.f32 %v2180_v46, %v326_v2 }
 0x291   :  { %v2195_v8 = vpop.eup %1828  ;;  %v343_v10 = vmul.f32 1.442695, %v331_v7  ;;  %v349_v32 = vmul.f32 1.442695, %v334_v41 }
 0x292   :  { %v369_v13 = vsel %vm302_vm2, %v2195_v8, 0.0 }
 0x293   :  { %370 = vadd.xlane.f32.xlu2 %v369_v13  ;;  %1830 = vpow2.f32 %v343_v10  ;;  %v532_v13 = vld [vmem:[%s2621_s3 + $0x8] sm:$0xff] }
 0x294   :  { %1832 = vpow2.f32 %v341_v9 }
 0x296   :  { %v320_v14 = vpop.xlane.xlu2 %319 }
 0x297   :  { %v332_v11 = vsub.f32 %v265_v50, %v320_v14  ;;  %v531_v14 = vld [vmem:[%s2621_s3] sm:$0xff] }
 0x299   :  { %v1831_v19 = vpop.eup %1830  ;;  %v345_v29 = vmul.f32 1.442695, %v332_v11 }
 0x29a   :  { %v363_v20 = vsel %vm302_vm2, %v1831_v19, 0.0  ;;  %v1833_v31 = vpop.eup %1832 }
 0x29b   :  { %1795 = vrot.lane.b32.xlu0 %v1794_v18, %s2001_s1  ;;  %364 = vadd.xlane.f32.xlu1 %v363_v20  ;;  %1834 = vpow2.f32 %v345_v29  ;;  %v360_v33 = vsel %vm302_vm2, %v1833_v31, 0.0 }
 0x29c   :  { %1836 = vpow2.f32 %v337_v16 }
 0x29e   :  { %v1786_v21 = vpop.permute.xlu2 %1785 }
 0x29f   :  { %v1787_v22 = vunpack.i.l.bf16 %v1786_v21  ;;  %v1788_v23 = vunpack.i.h.bf16 %v1786_v21  ;;  %v533_v21 = vld [vmem:[%s2621_s3 + $0x10] sm:$0xff] }
 0x2a1   :  { %452 = vmatpush.msra.mxu2 %v1787_v22  ;;  %v1835_v34 = vpop.eup %1834 }
 0x2a2   :  { %v366_v35 = vsel %vm302_vm2, %v1835_v34, 0.0  ;;  %v1837_v17 = vpop.eup %1836 }
 0x2a3   :  { %453 = vmatpush.msra.mxu2 %v1788_v23  ;;  %v354_v37 = vsel %vm302_vm2, %v1837_v17, 0.0 }
 0x2a5   :  { %585 = vmatpush.msrb.mxu2 %v532_v13  ;;  %v723_v13 = vld [vmem:[%s2622_s4 + $0x18] sm:$0xff] }
 0x2b4   :  { %1790 = vrot.lane.b32.xlu1 %v1789_v27, %s2001_s1 }
 0x2c5   :  { %361 = vadd.xlane.f32.xlu0 %v360_v33 }
 0x2cd   :  { %367 = vadd.xlane.f32.xlu0 %v366_v35 }
 0x2de   :  { %355 = vadd.xlane.f32.xlu1 %v354_v37 }
 0x2e1   :  { %1800 = vrot.lane.b32.xlu0 %v1799_v38, %s2001_s1  ;;  %v665_v38 = vperm.slane %v2079_v6, 1 }
 0x2f2   :  { %v359_v39 = vpop.xlane.xlu0 %358 }
 0x2f3   :  { %1838 = vrcp.f32 %v359_v39 }
 0x2f4   :  { %1840 = vpow2.f32 %v349_v32 }
 0x2f9   :  { %v1839_v40 = vpop.eup %1838 }
 0x2fa   :  { %v385_v42 = vmul.f32 %v1839_v40, %v1825_v59  ;;  %v353_v43 = vpop.xlane.xlu0 %352  ;;  %v1841_v44 = vpop.eup %1840 }
 0x2fb   :  { %1842 = vrcp.f32 %v353_v43  ;;  %v372_v45 = vsel %vm302_vm2, %v1841_v44, 0.0 }
 0x2fc   :  { %1691 = vmatmul.msk.f32.vlgmr.msra.gmra.mxu2 %vm302_vm2, %v385_v42 }
 0x301   :  { %v1843_v15 = vpop.eup %1842 }
 0x302   :  { %v383_v49 = vmul.f32 %v1843_v15, %v2191_v61 }
 0x306   :  { %v371_v61 = vpop.xlane.xlu2 %370 }
 0x30b   :  { %373 = vadd.xlane.f32.xlu0 %v372_v45 }
 0x30d   :  { %v1796_v12 = vpop.permute.xlu0 %1795 }
 0x30e   :  { %v1797_v47 = vunpack.i.l.bf16 %v1796_v12  ;;  %v1798_v48 = vunpack.i.h.bf16 %v1796_v12  ;;  %v365_v46 = vpop.xlane.xlu1 %364 }
 0x30f   :  { %1844 = vrcp.f32 %v365_v46 }
 0x310   :  { %417 = vmatpush.msrb.mxu1 %v1797_v47 }
 0x312   :  { %418 = vmatpush.msrb.mxu1 %v1798_v48 }
 0x313   :  { %1689 = vmatmul.msk.f32.vlgmr.msrb.gmra.mxu1 %vm302_vm2, %v383_v49 }
 0x314   :  { %556 = vmatpush.msra.mxu1 %v531_v14  ;;  %v722_v14 = vld [vmem:[%s2622_s4 + $0x10] sm:$0xff] }
 0x315   :  { %v1845_v51 = vpop.eup %1844 }
 0x316   :  { %v387_v54 = vmul.f32 %v1845_v51, %v1831_v19  ;;  %743 = vmatpush.msrb.mxu1 %v723_v13 }
 0x318   :  { %744 = vmatpush.msrb.mxu1 %v722_v14 }
 0x326   :  { %v1791_v50 = vpop.permute.xlu1 %1790 }
 0x327   :  { %v1792_v52 = vunpack.i.l.bf16 %v1791_v50  ;;  %v1793_v53 = vunpack.i.h.bf16 %v1791_v50 }
 0x329   :  { %487 = vmatpush.msra.mxu3 %v1792_v52 }
 0x32b   :  { %488 = vmatpush.msra.mxu3 %v1793_v53 }
 0x32c   :  { %1693 = vmatmul.msk.f32.vlgmr.msra.gmra.mxu3 %vm302_vm2, %v387_v54  ;;  %v2002_v54 = vmov 32.0  }
 0x32d   :  { %614 = vmatpush.msrb.mxu3 %v533_v21 }
 0x338   :  { %v362_v55 = vpop.xlane.xlu0 %361 }
 0x339   :  { %1846 = vrcp.f32 %v362_v55 }
 0x33f   :  { %v1847_v56 = vpop.eup %1846 }
 0x340   :  { %v368_v57 = vpop.xlane.xlu0 %367  ;;  %v386_v58 = vmul.f32 %v1847_v56, %v1833_v31 }
 0x341   :  { %1848 = vrcp.f32 %v368_v57 }
 0x342   :  { %1692 = vmatmul.msk.f32.gmra.mxu2 %vm302_vm2, %v386_v58  ;;  %1850 = vrcp.f32 %v371_v61 }
 0x347   :  { %v1849_v59 = vpop.eup %1848 }
 0x348   :  { %v388_v60 = vmul.f32 %v1849_v59, %v1835_v34  ;;  %v1851_v0 = vpop.eup %1850 }
 0x349   :  { %v389_v3 = vmul.f32 %v1851_v0, %v2195_v8 }
 0x34a   :  { %1694 = vmatmul.msk.f32.gmra.mxu3 %vm302_vm2, %v388_v60 }
 0x351   :  { %v356_v62 = vpop.xlane.xlu1 %355 }
 0x352   :  { %1852 = vrcp.f32 %v356_v62 }
 0x353   :  { %v1801_v63 = vpop.permute.xlu0 %1800 }
 0x354   :  { %v1802_v1 = vunpack.i.l.bf16 %v1801_v63  ;;  %v1803_v2 = vunpack.i.h.bf16 %v1801_v63 }
 0x356   :  { %522 = vmatpush.msra.mxu0 %v1802_v1 }
 0x358   :  { %523 = vmatpush.msra.mxu0 %v1803_v2  ;;  %v1853_v7 = vpop.eup %1852 }
 0x359   :  { %1695 = vmatmul.msk.f32.vlgmr.msra.gmra.mxu0 %vm302_vm2, %v389_v3  ;;  %v384_v10 = vmul.f32 %v1853_v7, %v1837_v17 }
 0x35a   :  { %643 = vmatpush.msrb.mxu0 %v534_v24 }
 0x35b   :  { %1690 = vmatmul.msk.f32.gmra.mxu1 %vm302_vm2, %v384_v10 }
 0x37e   :  { %v374_v18 = vpop.xlane.xlu0 %373 }
 0x37f   :  { %1854 = vrcp.f32 %v374_v18  ;;  %v455_v8 = vpop.f32.mrf.mxu2  ;;  %v721_v18 = vld [vmem:[%s2622_s4 + $0x8] sm:$0xff] }
 0x380   :  { %1699 = vmatmul.msk.f32.vlgmr.msrb.gmra.mxu2 %vm165_vm1, %v455_v8  ;;  %1856 = vrcp.f32 %v2002_v54  ;;  %v720_v8 = vld [vmem:[%s2622_s4] sm:$0xff]  ;;  %745 = vmatpush.msrb.mxu1 %v721_v18 }
 0x382   :  { %746 = vmatpush.msrb.mxu1 %v720_v8 }
 0x385   :  { %v1855_v19 = vpop.eup %1854 }
 0x386   :  { %v390_v20 = vmul.f32 %v1855_v19, %v1841_v44  ;;  %v1857_v55 = vpop.eup %1856 }
 0x387   :  { %v61_v56 = vmul.f32 32.0, %v1857_v55  ;;  %vm65_vm3 = vweird.f32 %v1857_v55 }
 0x388   :  { %1696 = vmatmul.msk.f32.gmra.mxu0 %vm302_vm2, %v390_v20 }
 0x389   :  { %v62_v57 = vsub.f32 1.0, %v61_v56 }
 0x38b   :  { %v63_v58 = vmul.f32 %v1857_v55, %v62_v57  ;;  %v764_v57 = vperm.slane %v2079_v6, 3 }
 0x38d   :  { %v64_v59 = vadd.f32 %v1857_v55, %v63_v58 }
 0x38f   :  { %v2259_v60 = vsel %vm65_vm3, %v1857_v55, %v64_v59 }
 0x390   :  { %v420_v22 = vpop.f32.mrf.mxu1 }
 0x391   :  { %1697 = vmatmul.msk.f32.vlgmr.msra.gmra.mxu1 %vm165_vm1, %v420_v22 }
 0x3af   :  { %v490_v23 = vpop.f32.mrf.mxu3 }
 0x3b0   :  { %1701 = vmatmul.msk.f32.vlgmr.msrb.gmra.mxu3 %vm165_vm1, %v490_v23 }
 0x3c5   :  { %v458_v25 = vpop.f32.mrf.mxu2 }
 0x3c6   :  { %1700 = vmatmul.msk.f32.gmra.mxu2 %vm165_vm1, %v458_v25 }
 0x3cd   :  { %v493_v27 = vpop.f32.mrf.mxu3 }
 0x3ce   :  { %1702 = vmatmul.msk.f32.gmra.mxu3 %vm165_vm1, %v493_v27 }
 0x3d6   :  { %v525_v28 = vpop.f32.mrf.mxu0 }
 0x3d7   :  { %1703 = vmatmul.msk.f32.vlgmr.msrb.gmra.mxu0 %vm165_vm1, %v525_v28 }
 0x3d8   :  { %v423_v9 = vpop.f32.mrf.mxu1 }
 0x3d9   :  { %1698 = vmatmul.msk.f32.gmra.mxu1 %vm165_vm1, %v423_v9  ;;  %v714_v9 = vperm.slane %v2079_v6, 4 }
 0x403   :  { %v587_v31 = vpop.f32.mrf.mxu2 }
 0x404   :  { %v652_v35 = vsel %vm53_vm0, %v587_v31, 0.0  ;;  %v717_v31 = vperm.slane %v2079_v6, 5 }
 0x405   :  { %v528_v11 = vpop.f32.mrf.mxu0 }
 0x406   :  { %1704 = vmatmul.msk.f32.gmra.mxu0 %vm165_vm1, %v528_v11 }
 0x40e   :  { %v558_v29 = vpop.f32.mrf.mxu1 }
 0x40f   :  { %v651_v34 = vsel %vm53_vm0, %v558_v29, 0.0 }
 0x410   :  { %v653_v16 = vadd.f32 %v652_v35, %v651_v34  ;;  %v763_v35 = vld [vmem:[%s2623_s5 + $0x38] sm:$0xff] }
 0x411   :  { %780 = vmatpush.msra.mxu2 %v763_v35  ;;  %v841_v35 = vperm.slane %v2079_v6, 6 }
 0x433   :  { %v616_v33 = vpop.f32.mrf.mxu3 }
 0x434   :  { %v654_v36 = vsel %vm53_vm0, %v616_v33, 0.0 }
 0x435   :  { %v655_v17 = vadd.f32 %v654_v36, %v653_v16  ;;  %v762_v36 = vld [vmem:[%s2623_s5 + $0x30] sm:$0xff]  ;;  %v761_v16 = vld [vmem:[%s2623_s5 + $0x28] sm:$0xff] }
 0x436   :  { %781 = vmatpush.msra.mxu2 %v762_v36 }
 0x438   :  { %782 = vmatpush.msra.mxu2 %v761_v16 }
 0x449   :  { %v590_v44 = vpop.f32.mrf.mxu2 }
 0x44a   :  { %v659_v12 = vsel %vm53_vm0, %v590_v44, 0.0 }
 0x451   :  { %v619_v15 = vpop.f32.mrf.mxu3 }
 0x452   :  { %v661_v48 = vsel %vm53_vm0, %v619_v15, 0.0 }
 0x454   :  { %v645_v37 = vpop.f32.mrf.mxu0 }
 0x455   :  { %v656_v39 = vsel %vm53_vm0, %v645_v37, 0.0 }
 0x456   :  { %v657_v40 = vadd.f32 %v656_v39, %v655_v17  ;;  %v561_v43 = vpop.f32.mrf.mxu1 }
 0x457   :  { %v658_v45 = vsel %vm53_vm0, %v561_v43, 0.0 }
 0x458   :  { %v666_v41 = vadd.f32 %v665_v38, %v657_v40  ;;  %v660_v47 = vadd.f32 %v659_v12, %v658_v45  ;;  %v759_v40 = vld [vmem:[%s2623_s5 + $0x18] sm:$0xff] }
 0x45a   :  { %v668_v42 = vadd.f32 %v666_v41, %v2068_v4  ;;  %v662_v46 = vadd.f32 %v661_v48, %v660_v47 }
 0x45c   :  { %v670_v32 = vsel %vm53_vm0, %v668_v42, 0.0 }
 0x45d   :  { %671 = vadd.xlane.f32.xlu2 %v670_v32 }
 0x483   :  { %v648_v49 = vpop.f32.mrf.mxu0 }
 0x484   :  { %v663_v50 = vsel %vm53_vm0, %v648_v49, 0.0  ;;  %v758_v49 = vld [vmem:[%s2623_s5 + $0x10] sm:$0xff] }
 0x485   :  { %v664_v51 = vadd.f32 %v663_v50, %v662_v46  ;;  %v757_v46 = vld [vmem:[%s2623_s5 + $0x8] sm:$0xff]  ;;  %v756_v50 = vld [vmem:[%s2623_s5] sm:$0xff] }
 0x487   :  { %v667_v52 = vadd.f32 %v665_v38, %v664_v51  ;;  %v760_v38 = vld [vmem:[%s2623_s5 + $0x20] sm:$0xff]  ;;  %v724_v51 = vperm.slane %v2079_v6, 2 }
 0x488   :  { %783 = vmatpush.msra.mxu2 %v760_v38 }
 0x489   :  { %v669_v4 = vadd.f32 %v667_v52, %v2070_v5 }
 0x48a   :  { %784 = vmatpush.msra.mxu2 %v759_v40 }
 0x48b   :  { %v673_v53 = vsel %vm53_vm0, %v669_v4, 0.0 }
 0x48c   :  { %674 = vadd.xlane.f32.xlu1 %v673_v53  ;;  %785 = vmatpush.msra.mxu2 %v758_v49  ;;  %v2344_v49 = vld [vmem:[%s2624_s6 + $0x8] sm:$0xff] }
 0x48e   :  { %786 = vmatpush.msra.mxu2 %v757_v46  ;;  %v852_v46 = vperm.slane %v2344_v49, 0 }
 0x490   :  { %787 = vmatpush.msra.mxu2 %v756_v50 }
 0x4d0   :  { %v672_v61 = vpop.xlane.xlu2 %671 }
 0x4d1   :  { %v676_v62 = vmul.f32 %v672_v61, %v2259_v60 }
 0x4d3   :  { %v678_v63 = vsub.f32 %v668_v42, %v676_v62 }
 0x4d5   :  { %v680_v0 = vmul.f32 %v678_v63, %v678_v63 }
 0x4d7   :  { %v682_v5 = vsel %vm53_vm0, %v680_v0, 0.0 }
 0x4d8   :  { %683 = vadd.xlane.f32.xlu2 %v682_v5 }
 0x4ff   :  { %v675_v1 = vpop.xlane.xlu1 %674 }
 0x500   :  { %v677_v2 = vmul.f32 %v675_v1, %v2259_v60 }
 0x502   :  { %v679_v3 = vsub.f32 %v669_v4, %v677_v2 }
 0x504   :  { %v681_v7 = vmul.f32 %v679_v3, %v679_v3 }
 0x506   :  { %v685_v10 = vsel %vm53_vm0, %v681_v7, 0.0 }
 0x507   :  { %686 = vadd.xlane.f32.xlu1 %v685_v10 }
 0x54b   :  { %v684_v19 = vpop.xlane.xlu2 %683 }
 0x54c   :  { %v688_v20 = vmul.f32 %v684_v19, %v2259_v60 }
 0x54e   :  { %v690_v21 = vadd.f32 1e-05, %v688_v20 }
 0x550   :  { %1858 = vrsqrt.f32 %v690_v21  ;;  %vm698_vm5 = vweird.f32 %v690_v21 }
 0x556   :  { %v1859_v22 = vpop.eup %1858 }
 0x557   :  { %v693_v23 = vmul.f32 %v1859_v22, %v690_v21  ;;  %vm699_vm4 = vweird.f32 %v1859_v22  ;;  %v1712_v21 = vld [vmem:[%s2620_s2 + $0x38] sm:$0xff] }
 0x558   :  { %vm700_vm6 = vmor %vm698_vm5, %vm699_vm4  ;;  %871 = vmatpush.msra.mxu3 %v1712_v21 }
 0x559   :  { %v694_v24 = vmul.f32 %v1859_v22, %v693_v23  ;;  %v1710_v23 = vld [vmem:[%s2620_s2 + $0x28] sm:$0xff] }
 0x55b   :  { %v695_v25 = vmul.f32 0.5, %v694_v24  ;;  %v1709_v24 = vld [vmem:[%s2620_s2 + $0x20] sm:$0xff] }
 0x55d   :  { %v696_v27 = vsub.f32 1.5, %v695_v25 }
 0x55f   :  { %v697_v28 = vmul.f32 %v1859_v22, %v696_v27 }
 0x561   :  { %v701_v11 = vsel %vm700_vm6, %v1859_v22, %v697_v28  ;;  %v1711_v22 = vld [vmem:[%s2620_s2 + $0x30] sm:$0xff] }
 0x562   :  { %v712_v29 = vmul.f32 %v701_v11, %v678_v63  ;;  %872 = vmatpush.msra.mxu3 %v1711_v22 }
 0x564   :  { %v715_v33 = vmul.f32 %v714_v9, %v712_v29  ;;  %873 = vmatpush.msra.mxu3 %v1710_v23 }
 0x566   :  { %v718_v34 = vadd.f32 %v717_v31, %v715_v33  ;;  %874 = vmatpush.msra.mxu3 %v1709_v24 }
 0x568   :  { %1705 = vmatmul.msk.f32.vlgmr.msrb.gmra.mxu1 %vm53_vm0, %v718_v34 }
 0x57a   :  { %v687_v17 = vpop.xlane.xlu1 %686 }
 0x57b   :  { %v689_v37 = vmul.f32 %v687_v17, %v2259_v60  ;;  %v844_v17 = vperm.slane %v2079_v6, 7 }
 0x57d   :  { %v691_v39 = vadd.f32 1e-05, %v689_v37 }
 0x57f   :  { %1860 = vrsqrt.f32 %v691_v39  ;;  %vm708_vm8 = vweird.f32 %v691_v39 }
 0x585   :  { %v1861_v41 = vpop.eup %1860 }
 0x586   :  { %v703_v42 = vmul.f32 %v1861_v41, %v691_v39  ;;  %vm709_vm7 = vweird.f32 %v1861_v41 }
 0x587   :  { %vm710_vm9 = vmor %vm708_vm8, %vm709_vm7 }
 0x588   :  { %v704_v32 = vmul.f32 %v1861_v41, %v703_v42 }
 0x58a   :  { %v705_v43 = vmul.f32 0.5, %v704_v32 }
 0x58c   :  { %v706_v44 = vsub.f32 1.5, %v705_v43 }
 0x58e   :  { %v707_v45 = vmul.f32 %v1861_v41, %v706_v44 }
 0x590   :  { %v711_v12 = vsel %vm710_vm9, %v1861_v41, %v707_v45 }
 0x591   :  { %v713_v15 = vmul.f32 %v711_v12, %v679_v3 }
 0x593   :  { %v716_v47 = vmul.f32 %v714_v9, %v713_v15 }
 0x595   :  { %v719_v48 = vadd.f32 %v717_v31, %v716_v47 }
 0x597   :  { %1706 = vmatmul.msk.f32.gmra.mxu1 %vm53_vm0, %v719_v48 }
 0x5e5   :  { %v748_v52 = vpop.f32.mrf.mxu1 }
 0x5e6   :  { %v749_v4 = vadd.f32 %v748_v52, %v724_v51 }
 0x5e8   :  { %v754_v53 = vmax.f32 %v749_v4, 0.0 }
 0x5ea   :  { %1707 = vmatmul.msk.f32.vlgmr.msra.gmra.mxu2 %vm765_vm10, %v754_v53 }
 0x614   :  { %v751_v54 = vpop.f32.mrf.mxu1 }
 0x615   :  { %v752_v55 = vadd.f32 %v751_v54, %v724_v51 }
 0x617   :  { %v755_v56 = vmax.f32 %v752_v55, 0.0 }
 0x619   :  { %1708 = vmatmul.msk.f32.gmra.mxu2 %vm765_vm10, %v755_v56 }
 0x66d   :  { %v789_v58 = vpop.f32.mrf.mxu2 }
 0x66e   :  { %v790_v59 = vadd.f32 %v789_v58, %v764_v57 }
 0x670   :  { %v795_v61 = vadd.f32 %v790_v59, %v718_v34 }
 0x672   :  { %v797_v62 = vsel %vm53_vm0, %v795_v61, 0.0 }
 0x673   :  { %798 = vadd.xlane.f32.xlu2 %v797_v62 }
 0x69c   :  { %v792_v63 = vpop.f32.mrf.mxu2 }
 0x69d   :  { %v793_v0 = vadd.f32 %v792_v63, %v764_v57 }
 0x69f   :  { %v796_v5 = vadd.f32 %v793_v0, %v719_v48 }
 0x6a1   :  { %v800_v1 = vsel %vm53_vm0, %v796_v5, 0.0 }
 0x6a2   :  { %801 = vadd.xlane.f32.xlu1 %v800_v1 }
 0x6e6   :  { %v799_v2 = vpop.xlane.xlu2 %798 }
 0x6e7   :  { %v803_v3 = vmul.f32 %v799_v2, %v2259_v60 }
 0x6e9   :  { %v805_v7 = vsub.f32 %v795_v61, %v803_v3 }
 0x6eb   :  { %v807_v10 = vmul.f32 %v805_v7, %v805_v7 }
 0x6ed   :  { %v809_v13 = vsel %vm53_vm0, %v807_v10, 0.0 }
 0x6ee   :  { %810 = vadd.xlane.f32.xlu2 %v809_v13 }
 0x715   :  { %v802_v14 = vpop.xlane.xlu1 %801 }
 0x716   :  { %v804_v18 = vmul.f32 %v802_v14, %v2259_v60 }
 0x718   :  { %v806_v8 = vsub.f32 %v796_v5, %v804_v18 }
 0x71a   :  { %v808_v19 = vmul.f32 %v806_v8, %v806_v8 }
 0x71c   :  { %v812_v20 = vsel %vm53_vm0, %v808_v19, 0.0 }
 0x71d   :  { %813 = vadd.xlane.f32.xlu1 %v812_v20 }
 0x761   :  { %v811_v25 = vpop.xlane.xlu2 %810 }
 0x762   :  { %v815_v27 = vmul.f32 %v811_v25, %v2259_v60 }
 0x764   :  { %v817_v28 = vadd.f32 1e-05, %v815_v27 }
 0x766   :  { %1862 = vrsqrt.f32 %v817_v28  ;;  %vm825_vm12 = vweird.f32 %v817_v28 }
 0x76c   :  { %v1863_v9 = vpop.eup %1862 }
 0x76d   :  { %v820_v11 = vmul.f32 %v1863_v9, %v817_v28  ;;  %vm826_vm11 = vweird.f32 %v1863_v9 }
 0x76e   :  { %vm827_vm13 = vmor %vm825_vm12, %vm826_vm11 }
 0x76f   :  { %v821_v29 = vmul.f32 %v1863_v9, %v820_v11 }
 0x771   :  { %v822_v31 = vmul.f32 0.5, %v821_v29 }
 0x773   :  { %v823_v33 = vsub.f32 1.5, %v822_v31 }
 0x775   :  { %v824_v34 = vmul.f32 %v1863_v9, %v823_v33 }
 0x777   :  { %v828_v36 = vsel %vm827_vm13, %v1863_v9, %v824_v34 }
 0x778   :  { %v839_v16 = vmul.f32 %v828_v36, %v805_v7 }
 0x77a   :  { %v842_v37 = vmul.f32 %v841_v35, %v839_v16 }
 0x77c   :  { %v2332_v38 = vadd.f32 %v844_v17, %v842_v37 }
 0x77e   :  { %1713 = vmatmul.msk.f32.vlgmr.msra.gmra.mxu3 %vm53_vm0, %v2332_v38 }
 0x790   :  { %v814_v39 = vpop.xlane.xlu1 %813 }
 0x791   :  { %v816_v40 = vmul.f32 %v814_v39, %v2259_v60 }
 0x793   :  { %v818_v41 = vadd.f32 1e-05, %v816_v40 }
 0x795   :  { %1864 = vrsqrt.f32 %v818_v41  ;;  %vm835_vm15 = vweird.f32 %v818_v41 }
 0x79b   :  { %v1865_v42 = vpop.eup %1864 }
 0x79c   :  { %v830_v32 = vmul.f32 %v1865_v42, %v818_v41  ;;  %vm836_vm14 = vweird.f32 %v1865_v42 }
 0x79d   :  { %vm837_vm3 = vmor %vm835_vm15, %vm836_vm14 }
 0x79e   :  { %v831_v43 = vmul.f32 %v1865_v42, %v830_v32 }
 0x7a0   :  { %v832_v44 = vmul.f32 0.5, %v831_v43 }
 0x7a2   :  { %v833_v45 = vsub.f32 1.5, %v832_v44 }
 0x7a4   :  { %v834_v12 = vmul.f32 %v1865_v42, %v833_v45 }
 0x7a6   :  { %v838_v6 = vsel %vm837_vm3, %v1865_v42, %v834_v12 }
 0x7a7   :  { %v840_v15 = vmul.f32 %v838_v6, %v806_v8 }
 0x7a9   :  { %v843_v47 = vmul.f32 %v841_v35, %v840_v15 }
 0x7ab   :  { %v2337_v48 = vadd.f32 %v844_v17, %v843_v47 }
 0x7ad   :  { %1714 = vmatmul.msk.f32.gmra.mxu3 %vm53_vm0, %v2337_v48 }
 0x801   :  { %v876_v50 = vpop.f32.mrf.mxu3 }
 0x802   :  { %v2347_v51 = vadd.f32 %v876_v50, %v852_v46 }
 0x804   :  { %888 = vrot.lane.b32.xlu1 %v2347_v51, %s1999_s23 }
 0x830   :  { %v879_v52 = vpop.f32.mrf.mxu3 }
 0x831   :  { %v2351_v4 = vadd.f32 %v879_v52, %v852_v46 }
 0x833   :  { %894 = vrot.lane.b32.xlu2 %v2351_v4, %s1998_s22  ;;  %890 = vrot.lane.b32.xlu0 %v2351_v4, %s1999_s23 }
 0x83b   :  { %886 = vrot.lane.b32.xlu2 %v2351_v4, %s1997_s21  ;;  %892 = vrot.lane.b32.xlu0 %v2347_v51, %s1998_s22 }
 0x843   :  { %884 = vrot.lane.b32.xlu0 %v2347_v51, %s1997_s21 }
 0x876   :  { %v2363_v53 = vpop.permute.xlu1 %888 }
 0x877   :  { %966 = vrot.lane.b32.xlu0 %v2363_v53, %s2000_s24 }
 0x88d   :  { %v2367_v54 = vpop.permute.xlu2 %894 }
 0x88e   :  { %1003 = vrot.lane.b32.xlu2 %v2367_v54, %s2000_s24 }
 0x895   :  { %v2371_v55 = vpop.permute.xlu2 %886 }
 0x896   :  { %898 = vrot.lane.b32.xlu2 %v2351_v4, %s2000_s24  ;;  %933 = vrot.lane.b32.xlu0 %v2371_v55, %s2000_s24 }
 0x8a5   :  { %v891_v56 = vpop.permute.xlu0 %890 }
 0x8a6   :  { %968 = vrot.lane.b32.xlu1 %v891_v56, %s2000_s24  ;;  %v1804_v29 = vpack.i.bf16 %v2363_v53, %v891_v56 }
 0x8ad   :  { %v893_v57 = vpop.permute.xlu0 %892 }
 0x8ae   :  { %1001 = vrot.lane.b32.xlu1 %v893_v57, %s2000_s24  ;;  %v1809_v31 = vpack.i.bf16 %v893_v57, %v2367_v54 }
 0x8b5   :  { %v2379_v58 = vpop.permute.xlu0 %884 }
 0x8b6   :  { %896 = vrot.lane.b32.xlu1 %v2347_v51, %s2000_s24  ;;  %931 = vrot.lane.b32.xlu2 %v2379_v58, %s2000_s24 }
 0x8e8   :  { %v1004_v59 = vpop.permute.xlu2 %1003 }
 0x8e9   :  { %1727 = vmatpush.xpose.msk.msrb.mxu3 %vm165_vm1, %v1004_v59  ;;  %v967_v62 = vpop.permute.xlu0 %966 }
 0x8f0   :  { %v899_v61 = vpop.permute.xlu2 %898 }
 0x8f1   :  { %1715 = vmatpush.xpose.msk.msra.mxu0 %vm165_vm1, %v899_v61 }
 0x908   :  { %v934_v63 = vpop.permute.xlu0 %933 }
 0x909   :  { %1719 = vmatpush.xpose.msk.msra.mxu1 %vm165_vm1, %v934_v63 }
 0x910   :  { %v932_v0 = vpop.permute.xlu2 %931 }
 0x911   :  { %1720 = vmatpush.xpose.msk.msra.mxu1 %vm165_vm1, %v932_v0 }
 0x914   :  { %1721 = vmatmul.msk.f32.vlgmr.msra.gmra.mxu1 %vm165_vm1, %v2379_v58 }
 0x918   :  { %v969_v5 = vpop.permute.xlu1 %968 }
 0x919   :  { %1723 = vmatpush.xpose.msk.msrb.mxu2 %vm165_vm1, %v969_v5 }
 0x91c   :  { %1722 = vmatmul.msk.f32.gmra.mxu1 %vm165_vm1, %v2371_v55 }
 0x91d   :  { %1724 = vmatpush.xpose.msk.msrb.mxu2 %vm165_vm1, %v967_v62 }
 0x920   :  { %1725 = vmatmul.msk.f32.vlgmr.msrb.gmra.mxu2 %vm165_vm1, %v2363_v53  ;;  %v1002_v1 = vpop.permute.xlu1 %1001  ;;  %v1814_v53 = vpack.i.bf16 %v2371_v55, %v2351_v4 }
 0x921   :  { %1728 = vmatpush.xpose.msk.msrb.mxu3 %vm165_vm1, %v1002_v1 }
 0x924   :  { %1729 = vmatmul.msk.f32.vlgmr.msrb.gmra.mxu3 %vm165_vm1, %v893_v57 }
 0x928   :  { %1726 = vmatmul.msk.f32.gmra.mxu2 %vm165_vm1, %v891_v56  ;;  %v897_v2 = vpop.permute.xlu1 %896 }
 0x929   :  { %1716 = vmatpush.xpose.msk.msra.mxu0 %vm165_vm1, %v897_v2 }
 0x92c   :  { %1717 = vmatmul.msk.f32.vlgmr.msra.gmra.mxu0 %vm165_vm1, %v2347_v51  ;;  %1730 = vmatmul.msk.f32.gmra.mxu3 %vm165_vm1, %v2367_v54 }
 0x934   :  { %1718 = vmatmul.msk.f32.gmra.mxu0 %vm165_vm1, %v2351_v4 }
 0x991   :  { %v960_v3 = vpop.f32.mrf.mxu1 }
 0x992   :  { %v961_v7 = vadd.f32 %v960_v3, %v2155_v26 }
 0x994   :  { %v1042_v10 = vsel %vm302_vm2, %v961_v7, -inf }
 0x995   :  { %1043 = vmax.xlane.f32.xlu1 %v1042_v10 }
 0x999   :  { %v963_v20 = vpop.f32.mrf.mxu1 }
 0x99a   :  { %v2414_v22 = vadd.f32 %v963_v20, %v2162_v30 }
 0x99c   :  { %v1045_v25 = vsel %vm302_vm2, %v2414_v22, -inf }
 0x9a3   :  { %v995_v28 = vpop.f32.mrf.mxu2 }
 0x9a4   :  { %v996_v9 = vadd.f32 %v995_v28, %v2155_v26 }
 0x9a6   :  { %v1048_v11 = vsel %vm302_vm2, %v996_v9, -inf }
 0x9a7   :  { %v1030_v13 = vpop.f32.mrf.mxu3 }
 0x9a8   :  { %v1031_v14 = vadd.f32 %v1030_v13, %v2155_v26 }
 0x9a9   :  { %v925_v18 = vpop.f32.mrf.mxu0 }
 0x9aa   :  { %v926_v8 = vadd.f32 %v925_v18, %v2155_v26  ;;  %v1054_v19 = vsel %vm302_vm2, %v1031_v14, -inf }
 0x9ab   :  { %1055 = vmax.xlane.f32.xlu1 %v1054_v19  ;;  %v998_v42 = vpop.f32.mrf.mxu2 }
 0x9ac   :  { %v1036_v21 = vsel %vm302_vm2, %v926_v8, -inf  ;;  %v999_v43 = vadd.f32 %v998_v42, %v2162_v30 }
 0x9ad   :  { %1037 = vmax.xlane.f32.xlu0 %v1036_v21 }
 0x9ae   :  { %v1051_v45 = vsel %vm302_vm2, %v999_v43, -inf }
 0x9af   :  { %v1033_v12 = vpop.f32.mrf.mxu3 }
 0x9b0   :  { %v1034_v47 = vadd.f32 %v1033_v12, %v2162_v30 }
 0x9b1   :  { %v928_v23 = vpop.f32.mrf.mxu0 }
 0x9b2   :  { %v2417_v24 = vadd.f32 %v928_v23, %v2162_v30  ;;  %v1057_v52 = vsel %vm302_vm2, %v1034_v47, -inf }
 0x9b3   :  { %1046 = vmax.xlane.f32.xlu1 %v1045_v25 }
 0x9b4   :  { %v1039_v27 = vsel %vm302_vm2, %v2417_v24, -inf }
 0x9b5   :  { %1040 = vmax.xlane.f32.xlu0 %v1039_v27 }
 0x9bd   :  { %1049 = vmax.xlane.f32.xlu0 %v1048_v11 }
 0x9cc   :  { %1805 = vrot.lane.b32.xlu1 %v1804_v29, %s2001_s1 }
 0x9d1   :  { %1810 = vrot.lane.b32.xlu0 %v1809_v31, %s2001_s1 }
 0xa08   :  { %v1044_v33 = vpop.xlane.xlu1 %1043 }
 0xa09   :  { %v1062_v44 = vsub.f32 %v961_v7, %v1044_v33 }
 0xa0b   :  { %v1072_v15 = vmul.f32 1.442695, %v1062_v44 }
 0xa1e   :  { %v1056_v34 = vpop.xlane.xlu1 %1055 }
 0xa1f   :  { %v1066_v35 = vsub.f32 %v1031_v14, %v1056_v34 }
 0xa20   :  { %v1038_v36 = vpop.xlane.xlu0 %1037 }
 0xa21   :  { %v1080_v16 = vmul.f32 1.442695, %v1066_v35  ;;  %v1060_v17 = vsub.f32 %v926_v8, %v1038_v36 }
 0xa23   :  { %1866 = vpow2.f32 %v1080_v16  ;;  %v1068_v37 = vmul.f32 1.442695, %v1060_v17 }
 0xa25   :  { %1868 = vpow2.f32 %v1068_v37  ;;  %v1819_v37 = vpack.i.bf16 %v2379_v58, %v2347_v51 }
 0xa26   :  { %v1047_v6 = vpop.xlane.xlu1 %1046  ;;  %1870 = vpow2.f32 %v1072_v15 }
 0xa27   :  { %v1063_v5 = vsub.f32 %v2414_v22, %v1047_v6 }
 0xa28   :  { %v1041_v32 = vpop.xlane.xlu0 %1040 }
 0xa29   :  { %v1867_v26 = vpop.eup %1866  ;;  %v1074_v1 = vmul.f32 1.442695, %v1063_v5  ;;  %v1061_v19 = vsub.f32 %v2417_v24, %v1041_v32 }
 0xa2a   :  { %v1102_v39 = vsel %vm302_vm2, %v1867_v26, 0.0 }
 0xa2b   :  { %v2430_v40 = vpop.eup %1868  ;;  %1103 = vadd.xlane.f32.xlu0 %v1102_v39  ;;  %v1070_v21 = vmul.f32 1.442695, %v1061_v19  ;;  %v1399_v19 = vperm.slane %v2344_v49, 1 }
 0xa2c   :  { %v1084_v41 = vsel %vm302_vm2, %v2430_v40, 0.0  ;;  %v2441_v59 = vpop.eup %1870 }
 0xa2d   :  { %1085 = vadd.xlane.f32.xlu2 %v1084_v41  ;;  %v1090_v63 = vsel %vm302_vm2, %v2441_v59, 0.0  ;;  %v1741_v41 = vld [vmem:[%s2621_s3 + $0x30] sm:$0xff] }
 0xa30   :  { %v1050_v46 = vpop.xlane.xlu0 %1049 }
 0xa31   :  { %v1064_v50 = vsub.f32 %v996_v9, %v1050_v46 }
 0xa33   :  { %v1076_v56 = vmul.f32 1.442695, %v1064_v50 }
 0xa35   :  { %1052 = vmax.xlane.f32.xlu2 %v1051_v45  ;;  %1872 = vpow2.f32 %v1076_v56 }
 0xa36   :  { %1874 = vpow2.f32 %v1074_v1 }
 0xa3b   :  { %v1873_v4 = vpop.eup %1872 }
 0xa3c   :  { %v1096_v55 = vsel %vm302_vm2, %v1873_v4, 0.0  ;;  %v2447_v2 = vpop.eup %1874 }
 0xa3d   :  { %1058 = vmax.xlane.f32.xlu2 %v1057_v52  ;;  %v1093_v3 = vsel %vm302_vm2, %v2447_v2, 0.0  ;;  %v1739_v52 = vld [vmem:[%s2621_s3 + $0x20] sm:$0xff] }
 0xa3e   :  { %v1806_v54 = vpop.permute.xlu1 %1805 }
 0xa3f   :  { %v1807_v57 = vunpack.i.l.bf16 %v1806_v54  ;;  %1815 = vrot.lane.b32.xlu0 %v1814_v53, %s2001_s1  ;;  %v1808_v61 = vunpack.i.h.bf16 %v1806_v54  ;;  %v1740_v54 = vld [vmem:[%s2621_s3 + $0x28] sm:$0xff] }
 0xa41   :  { %1220 = vmatpush.msra.mxu2 %v1807_v57 }
 0xa43   :  { %v1811_v30 = vpop.permute.xlu0 %1810  ;;  %1221 = vmatpush.msra.mxu2 %v1808_v61 }
 0xa44   :  { %v1812_v62 = vunpack.i.l.bf16 %v1811_v30  ;;  %v1813_v0 = vunpack.i.h.bf16 %v1811_v30 }
 0xa45   :  { %1091 = vadd.xlane.f32.xlu2 %v1090_v63  ;;  %1348 = vmatpush.msrb.mxu2 %v1741_v41 }
 0xa46   :  { %1255 = vmatpush.msra.mxu3 %v1812_v62 }
 0xa48   :  { %1256 = vmatpush.msra.mxu3 %v1813_v0 }
 0xa4d   :  { %1097 = vadd.xlane.f32.xlu2 %v1096_v55 }
 0xa69   :  { %1094 = vadd.xlane.f32.xlu0 %v1093_v3 }
 0xa9e   :  { %v1104_v7 = vpop.xlane.xlu0 %1103 }
 0xa9f   :  { %1876 = vrcp.f32 %v1104_v7 }
 0xaa0   :  { %v1086_v10 = vpop.xlane.xlu2 %1085 }
 0xaa5   :  { %v1877_v13 = vpop.eup %1876 }
 0xaa6   :  { %v1122_v14 = vmul.f32 %v1877_v13, %v1867_v26  ;;  %v1742_v26 = vld [vmem:[%s2621_s3 + $0x38] sm:$0xff] }
 0xaa7   :  { %1377 = vmatpush.msrb.mxu3 %v1742_v26 }
 0xaa8   :  { %v1053_v18 = vpop.xlane.xlu2 %1052  ;;  %1737 = vmatmul.msk.f32.vlgmr.msra.gmra.mxu3 %vm302_vm2, %v1122_v14 }
 0xaa9   :  { %v1065_v8 = vsub.f32 %v999_v43, %v1053_v18 }
 0xaab   :  { %v1078_v20 = vmul.f32 1.442695, %v1065_v8 }
 0xaad   :  { %1878 = vpow2.f32 %v1078_v20 }
 0xaae   :  { %1880 = vpow2.f32 %v1070_v21 }
 0xab0   :  { %v1059_v22 = vpop.xlane.xlu2 %1058 }
 0xab1   :  { %v1067_v23 = vsub.f32 %v1034_v47, %v1059_v22  ;;  %v1816_v25 = vpop.permute.xlu0 %1815 }
 0xab2   :  { %v1818_v27 = vunpack.i.h.bf16 %v1816_v25  ;;  %v1817_v28 = vunpack.i.l.bf16 %v1816_v25 }
 0xab3   :  { %v1879_v9 = vpop.eup %1878  ;;  %v1082_v11 = vmul.f32 1.442695, %v1067_v23 }
 0xab4   :  { %1150 = vmatpush.msrb.mxu0 %v1817_v28  ;;  %1185 = vmatpush.msrb.mxu1 %v1818_v27  ;;  %v1099_v29 = vsel %vm302_vm2, %v1879_v9, 0.0  ;;  %v1881_v33 = vpop.eup %1880 }
 0xab5   :  { %1882 = vpow2.f32 %v1082_v11  ;;  %1100 = vadd.xlane.f32.xlu2 %v1099_v29  ;;  %v1087_v35 = vsel %vm302_vm2, %v1881_v33, 0.0 }
 0xab8   :  { %v1092_v31 = vpop.xlane.xlu2 %1091 }
 0xabb   :  { %v1883_v24 = vpop.eup %1882 }
 0xabc   :  { %v1105_v34 = vsel %vm302_vm2, %v1883_v24, 0.0 }
 0xabd   :  { %1106 = vadd.xlane.f32.xlu1 %v1105_v34  ;;  %1088 = vadd.xlane.f32.xlu2 %v1087_v35 }
 0xac0   :  { %v1098_v36 = vpop.xlane.xlu2 %1097 }
 0xac1   :  { %1884 = vrcp.f32 %v1098_v36 }
 0xac7   :  { %v1885_v16 = vpop.eup %1884 }
 0xac8   :  { %v1120_v17 = vmul.f32 %v1885_v16, %v1873_v4 }
 0xaca   :  { %1735 = vmatmul.msk.f32.vlgmr.msra.gmra.mxu2 %vm302_vm2, %v1120_v17 }
 0xad5   :  { %1820 = vrot.lane.b32.xlu2 %v1819_v37, %s2001_s1 }
 0xadc   :  { %v1095_v45 = vpop.xlane.xlu0 %1094 }
 0xb28   :  { %v1101_v39 = vpop.xlane.xlu2 %1100 }
 0xb29   :  { %1886 = vrcp.f32 %v1101_v39 }
 0xb2a   :  { %1888 = vrcp.f32 %v1086_v10 }
 0xb2b   :  { %1890 = vrcp.f32 %v1092_v31  ;;  %v1258_v57 = vpop.f32.mrf.mxu3 }
 0xb2f   :  { %v1887_v42 = vpop.eup %1886 }
 0xb30   :  { %v1089_v32 = vpop.xlane.xlu2 %1088  ;;  %v1107_v43 = vpop.xlane.xlu1 %1106  ;;  %v1121_v44 = vmul.f32 %v1887_v42, %v1879_v9 }
 0xb31   :  { %1892 = vrcp.f32 %v1107_v43  ;;  %v1889_v51 = vpop.eup %1888 }
 0xb32   :  { %1736 = vmatmul.msk.f32.gmra.mxu2 %vm302_vm2, %v1121_v44  ;;  %v1891_v58 = vpop.eup %1890  ;;  %1894 = vrcp.f32 %v1089_v32  ;;  %v1116_v50 = vmul.f32 %v1889_v51, %v2430_v40 }
 0xb33   :  { %1896 = vrcp.f32 %v1095_v45  ;;  %v1118_v53 = vmul.f32 %v1891_v58, %v2441_v59  ;;  %v1753_v45 = vld [vmem:[%s2622_s4 + $0x30] sm:$0xff] }
 0xb37   :  { %v1893_v12 = vpop.eup %1892 }
 0xb38   :  { %v1821_v6 = vpop.permute.xlu2 %1820  ;;  %v1123_v46 = vmul.f32 %v1893_v12, %v1883_v24  ;;  %v1895_v40 = vpop.eup %1894  ;;  %v1752_v12 = vld [vmem:[%s2622_s4 + $0x28] sm:$0xff] }
 0xb39   :  { %v1823_v15 = vunpack.i.h.bf16 %v1821_v6  ;;  %v1822_v47 = vunpack.i.l.bf16 %v1821_v6  ;;  %v1897_v56 = vpop.eup %1896  ;;  %v1117_v61 = vmul.f32 %v1895_v40, %v1881_v33  ;;  %v1751_v6 = vld [vmem:[%s2622_s4 + $0x20] sm:$0xff] }
 0xb3a   :  { %1738 = vmatmul.msk.f32.gmra.mxu3 %vm302_vm2, %v1123_v46  ;;  %v1119_v59 = vmul.f32 %v1897_v56, %v2447_v2  ;;  %v1761_v56 = vld [vmem:[%s2623_s5 + $0x60] sm:$0xff] }
 0xb3b   :  { %1151 = vmatpush.msrb.mxu0 %v1822_v47  ;;  %1186 = vmatpush.msrb.mxu1 %v1823_v15 }
 0xb3c   :  { %1731 = vmatmul.msk.f32.vlgmr.msrb.gmra.mxu0 %vm302_vm2, %v1116_v50  ;;  %1733 = vmatmul.msk.f32.vlgmr.msrb.gmra.mxu1 %vm302_vm2, %v1118_v53  ;;  %v1764_v50 = vld [vmem:[%s2623_s5 + $0x78] sm:$0xff]  ;;  %v1762_v53 = vld [vmem:[%s2623_s5 + $0x68] sm:$0xff] }
 0xb3d   :  { %1290 = vmatpush.msra.mxu0 %v1739_v52  ;;  %1319 = vmatpush.msra.mxu1 %v1740_v54  ;;  %v1763_v52 = vld [vmem:[%s2623_s5 + $0x70] sm:$0xff] }
 0xb3f   :  { %1515 = vmatpush.msrb.mxu1 %v1764_v50 }
 0xb41   :  { %1516 = vmatpush.msrb.mxu1 %v1763_v52 }
 0xb42   :  { %1749 = vmatmul.msk.f32.vlgmr.msrb.gmra.mxu3 %vm165_vm1, %v1258_v57 }
 0xb43   :  { %1517 = vmatpush.msrb.mxu1 %v1762_v53 }
 0xb44   :  { %1732 = vmatmul.msk.f32.gmra.mxu0 %vm302_vm2, %v1117_v61  ;;  %1734 = vmatmul.msk.f32.gmra.mxu1 %vm302_vm2, %v1119_v59  ;;  %v1760_v59 = vld [vmem:[%s2623_s5 + $0x58] sm:$0xff] }
 0xb45   :  { %1518 = vmatpush.msrb.mxu1 %v1761_v56 }
 0xb47   :  { %1519 = vmatpush.msrb.mxu1 %v1760_v59 }
 0xb4d   :  { %v1223_v30 = vpop.f32.mrf.mxu2 }
 0xb4e   :  { %1747 = vmatmul.msk.f32.vlgmr.msrb.gmra.mxu2 %vm165_vm1, %v1223_v30 }
 0xbb5   :  { %v1226_v62 = vpop.f32.mrf.mxu2 }
 0xbb6   :  { %1748 = vmatmul.msk.f32.gmra.mxu2 %vm165_vm1, %v1226_v62 }
 0xbb9   :  { %v1153_v63 = vpop.f32.mrf.mxu0  ;;  %v1188_v0 = vpop.f32.mrf.mxu1 }
 0xbba   :  { %1743 = vmatmul.msk.f32.vlgmr.msra.gmra.mxu0 %vm165_vm1, %v1153_v63  ;;  %1745 = vmatmul.msk.f32.vlgmr.msra.gmra.mxu1 %vm165_vm1, %v1188_v0 }
 0xbbd   :  { %v1261_v4 = vpop.f32.mrf.mxu3 }
 0xbbe   :  { %1750 = vmatmul.msk.f32.gmra.mxu3 %vm165_vm1, %v1261_v4 }
 0xbc1   :  { %v1156_v55 = vpop.f32.mrf.mxu0  ;;  %v1191_v5 = vpop.f32.mrf.mxu1 }
 0xbc2   :  { %1744 = vmatmul.msk.f32.gmra.mxu0 %vm165_vm1, %v1156_v55  ;;  %1746 = vmatmul.msk.f32.gmra.mxu1 %vm165_vm1, %v1191_v5 }
 0xbc5   :  { %v1379_v13 = vpop.f32.mrf.mxu3 }
 0xbc6   :  { %v1390_v20 = vsel %vm53_vm0, %v1379_v13, 0.0 }
 0xbd1   :  { %v1350_v2 = vpop.f32.mrf.mxu2 }
 0xbd2   :  { %v1388_v18 = vsel %vm53_vm0, %v1350_v2, 0.0 }
 0xc37   :  { %v1292_v1 = vpop.f32.mrf.mxu0  ;;  %v1321_v7 = vpop.f32.mrf.mxu1 }
 0xc38   :  { %v1385_v3 = vsel %vm53_vm0, %v1292_v1, 0.0  ;;  %v1386_v10 = vsel %vm53_vm0, %v1321_v7, 0.0  ;;  %v1448_v1 = vperm.slane %v2344_v49, 4 }
 0xc39   :  { %v1387_v14 = vadd.f32 %v1386_v10, %v1385_v3  ;;  %v1353_v23 = vpop.f32.mrf.mxu2  ;;  %v1451_v10 = vperm.slane %v2344_v49, 5 }
 0xc3a   :  { %v1395_v33 = vsel %vm53_vm0, %v1353_v23, 0.0 }
 0xc3b   :  { %v1389_v8 = vadd.f32 %v1388_v18, %v1387_v14 }
 0xc3d   :  { %v1391_v21 = vadd.f32 %v1390_v20, %v1389_v8 }
 0xc3f   :  { %v1295_v22 = vpop.f32.mrf.mxu0  ;;  %v1324_v27 = vpop.f32.mrf.mxu1  ;;  %v1400_v28 = vadd.f32 %v1399_v19, %v1391_v21 }
 0xc40   :  { %v1392_v25 = vsel %vm53_vm0, %v1295_v22, 0.0  ;;  %v1393_v9 = vsel %vm53_vm0, %v1324_v27, 0.0  ;;  %v1758_v27 = vld [vmem:[%s2623_s5 + $0x48] sm:$0xff] }
 0xc41   :  { %v1394_v11 = vadd.f32 %v1393_v9, %v1392_v25  ;;  %v1382_v29 = vpop.f32.mrf.mxu3  ;;  %v1402_v31 = vadd.f32 %v1400_v28, %v2332_v38  ;;  %v1759_v25 = vld [vmem:[%s2623_s5 + $0x50] sm:$0xff]  ;;  %v1757_v28 = vld [vmem:[%s2623_s5 + $0x40] sm:$0xff]  ;;  %v1459_v9 = vperm.slane %v2344_v49, 2 }
 0xc42   :  { %v1397_v35 = vsel %vm53_vm0, %v1382_v29, 0.0  ;;  %1520 = vmatpush.msrb.mxu1 %v1759_v25 }
 0xc43   :  { %v1396_v24 = vadd.f32 %v1395_v33, %v1394_v11  ;;  %v1404_v34 = vsel %vm53_vm0, %v1402_v31, 0.0 }
 0xc44   :  { %1405 = vadd.xlane.f32.xlu2 %v1404_v34  ;;  %1521 = vmatpush.msrb.mxu1 %v1758_v27 }
 0xc45   :  { %v1398_v36 = vadd.f32 %v1397_v35, %v1396_v24  ;;  %v1500_v35 = vperm.slane %v2344_v49, 3 }
 0xc46   :  { %1522 = vmatpush.msrb.mxu1 %v1757_v28 }
 0xc47   :  { %v1401_v16 = vadd.f32 %v1399_v19, %v1398_v36 }
 0xc49   :  { %v1403_v17 = vadd.f32 %v1401_v16, %v2337_v48  ;;  %v1754_v48 = vld [vmem:[%s2622_s4 + $0x38] sm:$0xff] }
 0xc4a   :  { %1478 = vmatpush.msrb.mxu0 %v1754_v48 }
 0xc4b   :  { %v1407_v37 = vsel %vm53_vm0, %v1403_v17, 0.0 }
 0xc4c   :  { %1408 = vadd.xlane.f32.xlu1 %v1407_v37  ;;  %1479 = vmatpush.msrb.mxu0 %v1753_v45 }
 0xc4e   :  { %1480 = vmatpush.msrb.mxu0 %v1752_v12 }
 0xc50   :  { %1481 = vmatpush.msrb.mxu0 %v1751_v6  ;;  %v1914_v6 = vld [vmem:[#allocation2] sm:$0xff] }
 0xcb7   :  { %v1406_v26 = vpop.xlane.xlu2 %1405 }
 0xcb8   :  { %v1410_v39 = vmul.f32 %v1406_v26, %v2259_v60 }
 0xcba   :  { %v1412_v41 = vsub.f32 %v1402_v31, %v1410_v39 }
 0xcbc   :  { %v1414_v38 = vmul.f32 %v1412_v41, %v1412_v41 }
 0xcbe   :  { %v1416_v42 = vsel %vm53_vm0, %v1414_v38, 0.0 }
 0xcbf   :  { %1417 = vadd.xlane.f32.xlu1 %v1416_v42  ;;  %v1409_v32 = vpop.xlane.xlu1 %1408 }
 0xcc0   :  { %v1411_v43 = vmul.f32 %v1409_v32, %v2259_v60 }
 0xcc2   :  { %v1413_v44 = vsub.f32 %v1403_v17, %v1411_v43 }
 0xcc4   :  { %v1415_v51 = vmul.f32 %v1413_v44, %v1413_v44 }
 0xcc6   :  { %v1419_v58 = vsel %vm53_vm0, %v1415_v51, 0.0 }
 0xcc7   :  { %1420 = vadd.xlane.f32.xlu0 %v1419_v58 }
 0xd32   :  { %v1418_v15 = vpop.xlane.xlu1 %1417 }
 0xd33   :  { %v1422_v47 = vmul.f32 %v1418_v15, %v2259_v60  ;;  %v54_v15 = vsel %vm53_vm0, %v1914_v6, 0.0 }
 0xd35   :  { %v1424_v46 = vadd.f32 1e-05, %v1422_v47 }
 0xd37   :  { %1898 = vrsqrt.f32 %v1424_v46  ;;  %vm1432_vm2 = vweird.f32 %v1424_v46 }
 0xd3a   :  { %v1421_v54 = vpop.xlane.xlu0 %1420 }
 0xd3b   :  { %v1423_v40 = vmul.f32 %v1421_v54, %v2259_v60 }
 0xd3d   :  { %v1899_v57 = vpop.eup %1898  ;;  %v1425_v61 = vadd.f32 1e-05, %v1423_v40 }
 0xd3e   :  { %v1427_v30 = vmul.f32 %v1899_v57, %v1424_v46  ;;  %vm1433_vm1 = vweird.f32 %v1899_v57  ;;  %v1915_v46 = vld [vmem:[#allocation2 + $0x8] sm:$0xff] }
 0xd3f   :  { %1900 = vrsqrt.f32 %v1425_v61  ;;  %vm1434_vm4 = vmor %vm1432_vm2, %vm1433_vm1  ;;  %vm1442_vm6 = vweird.f32 %v1425_v61  ;;  %v57_v50 = vsel %vm53_vm0, %v1915_v46, 0.0 }
 0xd40   :  { %v1428_v62 = vmul.f32 %v1899_v57, %v1427_v30 }
 0xd42   :  { %v1429_v63 = vmul.f32 0.5, %v1428_v62 }
 0xd44   :  { %v1430_v0 = vsub.f32 1.5, %v1429_v63 }
 0xd45   :  { %v1901_v4 = vpop.eup %1900 }
 0xd46   :  { %v1431_v55 = vmul.f32 %v1899_v57, %v1430_v0  ;;  %v1437_v5 = vmul.f32 %v1901_v4, %v1425_v61  ;;  %vm1443_vm5 = vweird.f32 %v1901_v4 }
 0xd47   :  { %vm1444_vm7 = vmor %vm1442_vm6, %vm1443_vm5 }
 0xd48   :  { %v1435_v2 = vsel %vm1434_vm4, %v1899_v57, %v1431_v55  ;;  %v1438_v3 = vmul.f32 %v1901_v4, %v1437_v5 }
 0xd49   :  { %v1446_v7 = vmul.f32 %v1435_v2, %v1412_v41 }
 0xd4a   :  { %v1439_v13 = vmul.f32 0.5, %v1438_v3 }
 0xd4b   :  { %v1449_v14 = vmul.f32 %v1448_v1, %v1446_v7 }
 0xd4c   :  { %v1440_v18 = vsub.f32 1.5, %v1439_v13  ;;  %v1576_v13 = vperm.slane %v2344_v49, 6 }
 0xd4d   :  { %v1452_v8 = vadd.f32 %v1451_v10, %v1449_v14 }
 0xd4e   :  { %v1441_v19 = vmul.f32 %v1901_v4, %v1440_v18 }
 0xd4f   :  { %1755 = vmatmul.msk.f32.vlgmr.msrb.gmra.mxu0 %vm53_vm0, %v1452_v8 }
 0xd50   :  { %v1445_v20 = vsel %vm1444_vm7, %v1901_v4, %v1441_v19 }
 0xd51   :  { %v1447_v21 = vmul.f32 %v1445_v20, %v1413_v44  ;;  %v1579_v20 = vperm.slane %v2344_v49, 7 }
 0xd53   :  { %v1450_v22 = vmul.f32 %v1448_v1, %v1447_v21 }
 0xd55   :  { %v1453_v23 = vadd.f32 %v1451_v10, %v1450_v22 }
 0xd57   :  { %1756 = vmatmul.msk.f32.gmra.mxu0 %vm53_vm0, %v1453_v23 }
 0xdcc   :  { %v1483_v11 = vpop.f32.mrf.mxu0 }
 0xdcd   :  { %v1484_v29 = vadd.f32 %v1483_v11, %v1459_v9 }
 0xdcf   :  { %v1489_v31 = vmax.f32 %v1484_v29, 0.0 }
 0xdd1   :  { %1765 = vmatmul.msk.f32.vlgmr.msrb.gmra.mxu1 %vm765_vm10, %v1489_v31 }
 0xdd4   :  { %v1486_v33 = vpop.f32.mrf.mxu0 }
 0xdd5   :  { %v1487_v24 = vadd.f32 %v1486_v33, %v1459_v9 }
 0xdd7   :  { %v1490_v34 = vmax.f32 %v1487_v24, 0.0 }
 0xdd9   :  { %1766 = vmatmul.msk.f32.gmra.mxu1 %vm765_vm10, %v1490_v34 }
 0xe4e   :  { %v1524_v36 = vpop.f32.mrf.mxu1 }
 0xe4f   :  { %v1525_v16 = vadd.f32 %v1524_v36, %v1500_v35 }
 0xe51   :  { %v1530_v17 = vadd.f32 %v1525_v16, %v1452_v8 }
 0xe53   :  { %v1532_v37 = vsel %vm53_vm0, %v1530_v17, 0.0 }
 0xe54   :  { %1533 = vadd.xlane.f32.xlu1 %v1532_v37 }
 0xe56   :  { %v1527_v26 = vpop.f32.mrf.mxu1 }
 0xe57   :  { %v1528_v39 = vadd.f32 %v1527_v26, %v1500_v35 }
 0xe59   :  { %v1531_v41 = vadd.f32 %v1528_v39, %v1453_v23 }
 0xe5b   :  { %v1535_v38 = vsel %vm53_vm0, %v1531_v41, 0.0 }
 0xe5c   :  { %1536 = vadd.xlane.f32.xlu0 %v1535_v38 }
 0xec7   :  { %v1534_v42 = vpop.xlane.xlu1 %1533 }
 0xec8   :  { %v1538_v32 = vmul.f32 %v1534_v42, %v2259_v60 }
 0xeca   :  { %v1540_v43 = vsub.f32 %v1530_v17, %v1538_v32  ;;  %v2585_v32 = vld [vmem:[%s2624_s6 + $0x10] sm:$0xff]  ;;  %s2003_s6 = smov [#allocation5]  }
 0xecb   :  { %s1638_s3 = sshll.u32 %s2003_s6, 4  ;;  %s1639_s3 = int_to_ptr.vmem [resolvable:$true] %s1638_s3 }
 0xecc   :  { %v1542_v44 = vmul.f32 %v1540_v43, %v1540_v43 }
 0xece   :  { %v1544_v51 = vsel %vm53_vm0, %v1542_v44, 0.0 }
 0xecf   :  { %v1537_v58 = vpop.xlane.xlu0 %1536  ;;  %1545 = vadd.xlane.f32.xlu1 %v1544_v51 }
 0xed0   :  { %v1539_v48 = vmul.f32 %v1537_v58, %v2259_v60  ;;  %v105_v58 = vperm.slane %v2585_v32, 2 }
 0xed2   :  { %v1541_v45 = vsub.f32 %v1531_v41, %v1539_v48 }
 0xed4   :  { %v1543_v12 = vmul.f32 %v1541_v45, %v1541_v45 }
 0xed6   :  { %v1547_v47 = vsel %vm53_vm0, %v1543_v12, 0.0 }
 0xed7   :  { %1548 = vadd.xlane.f32.xlu0 %v1547_v47  ;;  %55 = vadd.xlane.f32.xlu1 %v54_v15 }
 0xedf   :  { %58 = vadd.xlane.f32.xlu0 %v57_v50  ;;  %v108_v50 = vperm.slane %v2585_v32, 3 }
 0xf42   :  { %v1546_v52 = vpop.xlane.xlu1 %1545 }
 0xf43   :  { %v1550_v53 = vmul.f32 %v1546_v52, %v2259_v60 }
 0xf45   :  { %v1552_v54 = vadd.f32 1e-05, %v1550_v53 }
 0xf47   :  { %1902 = vrsqrt.f32 %v1552_v54  ;;  %vm1560_vm9 = vweird.f32 %v1552_v54 }
 0xf4a   :  { %v1549_v40 = vpop.xlane.xlu0 %1548  ;;  %v56_v56 = vpop.xlane.xlu1 %55 }
 0xf4b   :  { %v1551_v57 = vmul.f32 %v1549_v40, %v2259_v60  ;;  %v67_v61 = vmul.f32 %v2259_v60, %v56_v56 }
 0xf4d   :  { %v1903_v59 = vpop.eup %1902  ;;  %v1553_v30 = vadd.f32 1e-05, %v1551_v57  ;;  %v2563_v62 = vsub.f32 %v1914_v6, %v67_v61 }
 0xf4e   :  { %v1555_v63 = vmul.f32 %v1903_v59, %v1552_v54  ;;  %vm1561_vm8 = vweird.f32 %v1903_v59 }
 0xf4f   :  { %1904 = vrsqrt.f32 %v1553_v30  ;;  %v71_v0 = vmul.f32 %v2563_v62, %v2563_v62  ;;  %vm1562_vm10 = vmor %vm1560_vm9, %vm1561_vm8  ;;  %vm1570_vm12 = vweird.f32 %v1553_v30 }
 0xf50   :  { %v1556_v4 = vmul.f32 %v1903_v59, %v1555_v63 }
 0xf51   :  { %v73_v55 = vsel %vm53_vm0, %v71_v0, 0.0 }
 0xf52   :  { %v1557_v5 = vmul.f32 0.5, %v1556_v4  ;;  %74 = vadd.xlane.f32.xlu0 %v73_v55  ;;  %v59_v10 = vpop.xlane.xlu0 %58 }
 0xf53   :  { %v68_v8 = vmul.f32 %v2259_v60, %v59_v10 }
 0xf54   :  { %v1558_v1 = vsub.f32 1.5, %v1557_v5 }
 0xf55   :  { %v1905_v2 = vpop.eup %1904  ;;  %v2571_v25 = vsub.f32 %v1915_v46, %v68_v8 }
 0xf56   :  { %v1559_v3 = vmul.f32 %v1903_v59, %v1558_v1  ;;  %v1565_v7 = vmul.f32 %v1905_v2, %v1553_v30  ;;  %vm1571_vm11 = vweird.f32 %v1905_v2 }
 0xf57   :  { %vm1572_vm13 = vmor %vm1570_vm12, %vm1571_vm11  ;;  %v72_v29 = vmul.f32 %v2571_v25, %v2571_v25 }
 0xf58   :  { %v1566_v14 = vmul.f32 %v1905_v2, %v1565_v7  ;;  %v1563_v18 = vsel %vm1562_vm10, %v1903_v59, %v1559_v3 }
 0xf59   :  { %v1574_v19 = vmul.f32 %v1563_v18, %v1540_v43  ;;  %v76_v49 = vsel %vm53_vm0, %v72_v29, 0.0 }
 0xf5a   :  { %v1567_v21 = vmul.f32 0.5, %v1566_v14 }
 0xf5b   :  { %v1577_v22 = vmul.f32 %v1576_v13, %v1574_v19 }
 0xf5c   :  { %v1568_v23 = vsub.f32 1.5, %v1567_v21 }
 0xf5d   :  { %v1580_v27 = vadd.f32 %v1579_v20, %v1577_v22 }
 0xf5e   :  { %v1569_v28 = vmul.f32 %v1905_v2, %v1568_v23 }
 0xf5f   :  { %v1582_v9 = vsel %vm53_vm0, %v1580_v27, 0.0 }
 0xf60   :  { %1583 = vadd.xlane.f32.xlu2 %v1582_v9  ;;  %v1573_v11 = vsel %vm1572_vm13, %v1905_v2, %v1569_v28 }
 0xf61   :  { %v1575_v31 = vmul.f32 %v1573_v11, %v1541_v45 }
 0xf63   :  { %v1578_v33 = vmul.f32 %v1576_v13, %v1575_v31 }
 0xf65   :  { %v1581_v24 = vadd.f32 %v1579_v20, %v1578_v33 }
 0xf67   :  { %v1585_v34 = vsel %vm53_vm0, %v1581_v24, 0.0 }
 0xf68   :  { %77 = vadd.xlane.f32.xlu2 %v76_v49  ;;  %1586 = vadd.xlane.f32.xlu1 %v1585_v34 }
 0xfc5   :  { %v75_v35 = vpop.xlane.xlu0 %74 }
 0xfc6   :  { %v79_v36 = vmul.f32 %v75_v35, %v2259_v60 }
 0xfc8   :  { %v81_v16 = vadd.f32 1e-05, %v79_v36 }
 0xfca   :  { %1906 = vrsqrt.f32 %v81_v16  ;;  %vm89_vm14 = vweird.f32 %v81_v16 }
 0xfd0   :  { %v1907_v17 = vpop.eup %1906 }
 0xfd1   :  { %v84_v37 = vmul.f32 %v1907_v17, %v81_v16  ;;  %vm90_vm15 = vweird.f32 %v1907_v17 }
 0xfd2   :  { %vm91_vm3 = vmor %vm89_vm14, %vm90_vm15 }
 0xfd3   :  { %v85_v26 = vmul.f32 %v1907_v17, %v84_v37  ;;  %v1584_v39 = vpop.xlane.xlu2 %1583 }
 0xfd4   :  { %v1588_v41 = vmul.f32 %v1584_v39, %v2259_v60 }
 0xfd5   :  { %v86_v38 = vmul.f32 0.5, %v85_v26 }
 0xfd6   :  { %v2580_v42 = vsub.f32 %v1580_v27, %v1588_v41  ;;  %v1626_v27 = vperm.slane %v2585_v32, 0 }
 0xfd7   :  { %v87_v43 = vsub.f32 1.5, %v86_v38 }
 0xfd8   :  { %v1592_v44 = vmul.f32 %v2580_v42, %v2580_v42 }
 0xfd9   :  { %v88_v51 = vmul.f32 %v1907_v17, %v87_v43 }
 0xfda   :  { %v1594_v48 = vsel %vm53_vm0, %v1592_v44, 0.0 }
 0xfdb   :  { %v92_v45 = vsel %vm91_vm3, %v1907_v17, %v88_v51  ;;  %v78_v12 = vpop.xlane.xlu2 %77  ;;  %1595 = vadd.xlane.f32.xlu1 %v1594_v48  ;;  %v1587_v6 = vpop.xlane.xlu1 %1586 }
 0xfdc   :  { %v103_v15 = vmul.f32 %v92_v45, %v2563_v62  ;;  %v80_v47 = vmul.f32 %v78_v12, %v2259_v60  ;;  %v1589_v46 = vmul.f32 %v1587_v6, %v2259_v60 }
 0xfde   :  { %v106_v52 = vmul.f32 %v105_v58, %v103_v15  ;;  %v82_v53 = vadd.f32 1e-05, %v80_v47  ;;  %v1591_v54 = vsub.f32 %v1581_v24, %v1589_v46 }
 0xfe0   :  { %1908 = vrsqrt.f32 %v82_v53  ;;  %v1593_v40 = vmul.f32 %v1591_v54, %v1591_v54  ;;  %v109_v56 = vadd.f32 %v108_v50, %v106_v52  ;;  %vm99_vm1 = vweird.f32 %v82_v53 }
 0xfe2   :  { %v1597_v57 = vsel %vm53_vm0, %v1593_v40, 0.0  ;;  %111 = vst.msk [vmem:[#allocation5] sm:$0xff] %vm53_vm0, %v109_v56 }
 0xfe3   :  { %1598 = vadd.xlane.f32.xlu0 %v1597_v57 }
 0xfe6   :  { %v1909_v61 = vpop.eup %1908 }
 0xfe7   :  { %v94_v59 = vmul.f32 %v1909_v61, %v82_v53  ;;  %vm100_vm2 = vweird.f32 %v1909_v61 }
 0xfe8   :  { %vm101_vm4 = vmor %vm99_vm1, %vm100_vm2 }
 0xfe9   :  { %v95_v30 = vmul.f32 %v1909_v61, %v94_v59 }
 0xfeb   :  { %v96_v62 = vmul.f32 0.5, %v95_v30 }
 0xfed   :  { %v97_v63 = vsub.f32 1.5, %v96_v62 }
 0xfef   :  { %v98_v0 = vmul.f32 %v1909_v61, %v97_v63 }
 0xff1   :  { %v102_v4 = vsel %vm101_vm4, %v1909_v61, %v98_v0 }
 0xff2   :  { %v104_v55 = vmul.f32 %v102_v4, %v2571_v25 }
 0xff4   :  { %v107_v5 = vmul.f32 %v105_v58, %v104_v55 }
 0xff6   :  { %v110_v1 = vadd.f32 %v108_v50, %v107_v5 }
 0xff8   :  { %112 = vst.msk [vmem:[#allocation5 + $0x8] sm:$0xff] %vm53_vm0, %v110_v1 }
 0xff9   :  { %1646 = dma.vmem_to_hbm [thread:$0]  %s1639_s3, 256, %s1641_s20, [#allocation4], %s1995_s10, %s1995_s10, %s1996_s11  }
0x104e   :  { %v1596_v2 = vpop.xlane.xlu1 %1595 }
0x104f   :  { %v1600_v3 = vmul.f32 %v1596_v2, %v2259_v60 }
0x1051   :  { %v1602_v7 = vadd.f32 1e-05, %v1600_v3 }
0x1053   :  { %1910 = vrsqrt.f32 %v1602_v7  ;;  %vm1610_vm6 = vweird.f32 %v1602_v7 }
0x1056   :  { %v1599_v10 = vpop.xlane.xlu0 %1598 }
0x1057   :  { %v1601_v13 = vmul.f32 %v1599_v10, %v2259_v60  ;;  %v1629_v60 = vperm.slane %v2585_v32, 1 }
0x1059   :  { %v1911_v14 = vpop.eup %1910  ;;  %v1603_v18 = vadd.f32 1e-05, %v1601_v13 }
0x105a   :  { %v1605_v8 = vmul.f32 %v1911_v14, %v1602_v7  ;;  %vm1611_vm5 = vweird.f32 %v1911_v14 }
0x105b   :  { %1912 = vrsqrt.f32 %v1603_v18  ;;  %vm1612_vm7 = vmor %vm1610_vm6, %vm1611_vm5  ;;  %vm1620_vm9 = vweird.f32 %v1603_v18 }
0x105c   :  { %v1606_v19 = vmul.f32 %v1911_v14, %v1605_v8 }
0x105e   :  { %v1607_v20 = vmul.f32 0.5, %v1606_v19 }
0x1060   :  { %v1608_v21 = vsub.f32 1.5, %v1607_v20 }
0x1061   :  { %v1913_v22 = vpop.eup %1912 }
0x1062   :  { %v1609_v23 = vmul.f32 %v1911_v14, %v1608_v21  ;;  %v1615_v25 = vmul.f32 %v1913_v22, %v1603_v18  ;;  %vm1621_vm8 = vweird.f32 %v1913_v22 }
0x1063   :  { %vm1622_vm10 = vmor %vm1620_vm9, %vm1621_vm8 }
0x1064   :  { %v1613_v28 = vsel %vm1612_vm7, %v1911_v14, %v1609_v23  ;;  %v1616_v9 = vmul.f32 %v1913_v22, %v1615_v25 }
0x1065   :  { %v1624_v11 = vmul.f32 %v1613_v28, %v2580_v42 }
0x1066   :  { %v1617_v29 = vmul.f32 0.5, %v1616_v9 }
0x1067   :  { %v1627_v31 = vmul.f32 %v1626_v27, %v1624_v11 }
0x1068   :  { %v1618_v33 = vsub.f32 1.5, %v1617_v29 }
0x1069   :  { %v1630_v49 = vadd.f32 %v1629_v60, %v1627_v31 }
0x106a   :  { %v1619_v24 = vmul.f32 %v1913_v22, %v1618_v33 }
0x106b   :  { %1632 = vst.msk [vmem:[#allocation6] sm:$0xff] %vm53_vm0, %v1630_v49 }
0x106c   :  { %v1623_v34 = vsel %vm1622_vm10, %v1913_v22, %v1619_v24 }
0x106d   :  { %v1625_v35 = vmul.f32 %v1623_v34, %v1591_v54 }
0x106f   :  { %v1628_v36 = vmul.f32 %v1626_v27, %v1625_v35 }
0x1071   :  { %v1631_v16 = vadd.f32 %v1629_v60, %v1628_v36 }
0x1073   :  { %1633 = vst.msk [vmem:[#allocation6 + $0x8] sm:$0xff] %vm53_vm0, %v1631_v16 }
0x1074   :  { %1659 = dma.vmem_to_hbm [thread:$0]  %s1652_s25, 256, %s1654_s28, [#allocation7], %s1995_s10, %s1995_s10, %s1996_s11  }
0x1075   :  { %1990 = dma.done.wait [#allocation4], 256  }
0x1076   :  { %1991 = vsyncadd [#allocation4], 4294967040 }
0x1077   :  { %1992 = dma.done.wait [#allocation7], 256  }
0x1078   :  { %1993 = vsyncadd [#allocation7], 4294967040 }
0x1079   :  { %1668 = vsyncpa [#allocation3], 1 }
0x107a   :  { %1669 = vsyncpa [#allocation4], 1 }
0x107b   :  { %1670 = vsyncpa [#allocation7], 1 }

</bundles_post_ra>
